<compile_context>
chip_gen: v7x
topology: tpu7x:2x2x1
jax: 0.10.0
libtpu: 0.0.40
codegen_flags: <defaults>
</compile_context>

<pallas_src>
import functools

import jax
import jax.numpy as jnp
import numpy as np
from jax.experimental import pallas as pl
from jax.experimental.pallas import tpu as pltpu


def mha_kernel(q_ref, k_ref, v_ref,
               wq_ref, wk_ref, wv_ref, wo_ref,
               bq_ref, bk_ref, bv_ref, bo_ref,
               *refs, n_heads, head_dim, matmul_dtype, return_attn):
    """One (batch element, query tile) step of multi-head attention."""
    if return_attn:
        out_ref, attn_ref, kp_s, vp_s = refs
    else:
        out_ref, kp_s, vp_s = refs
        attn_ref = None

    f32 = jnp.float32
    cast = lambda x: x.astype(matmul_dtype)
    inv_scale = 1.0 / (float(head_dim) ** 0.5)
    nh, hd = n_heads, head_dim
    tq = q_ref.shape[1]
    skv = kp_s.shape[0]

    # K/V projections depend only on the batch element: compute them once per
    # batch element (qi == 0; the query-tile axis is "arbitrary", so it runs
    # first on each core) into persistent VMEM scratch, reuse for every tile.
    @pl.when(pl.program_id(1) == 0)
    def _():
        k = cast(k_ref[0])                                            # (S, H)
        v = cast(v_ref[0])                                            # (S, H)
        kp_s[...] = (jnp.dot(k, cast(wk_ref[...]), preferred_element_type=f32)
                     + bk_ref[...])
        vp_s[...] = (jnp.dot(v, cast(wv_ref[...]), preferred_element_type=f32)
                     + bv_ref[...])

    # Full-width Q projection (K = N = H): one weight push, full MXU rows/cols.
    # 1/sqrt(head_dim) is folded into Q once instead of scaling (S, S) tiles.
    q = cast(q_ref[0])                                                # (TQ, H)
    qp = (jnp.dot(q, cast(wq_ref[...]), preferred_element_type=f32)
          + bq_ref[...]) * inv_scale                                  # (TQ, H)

    # Split heads from data already in VMEM (cheap relayout, no MXU work).
    qh = qp.reshape(tq, nh, hd).transpose(1, 0, 2)                    # (NH, TQ, hd)
    kh = kp_s[...].reshape(skv, nh, hd).transpose(1, 0, 2)            # (NH, S, hd)
    vh = vp_s[...].reshape(skv, nh, hd).transpose(1, 0, 2)            # (NH, S, hd)

    # Q @ K^T for all heads in one batched dot_general (no explicit transpose).
    energy = jax.lax.dot_general(cast(qh), cast(kh),
                                 (((2,), (2,)), ((0,), (0,))),
                                 preferred_element_type=f32)          # (NH, TQ, S)

    # Exact f32 softmax.  mask=None path only; dropout is identity (eval mode).
    # TODO(synk): masked_fill branch for mask != None is not implemented.
    # TODO(synk): for large S, pack energies lane-dense / go flash-style.
    e = energy - jnp.max(energy, axis=-1, keepdims=True)
    p = jnp.exp(e)
    attn = p / jnp.sum(p, axis=-1, keepdims=True)                     # (NH, TQ, S)
    if return_attn:
        attn_ref[0] = attn.astype(attn_ref.dtype)                     # full-block store

    # attn @ V for all heads, then ONE full-width fc_o matmul (contraction K=H).
    ctx = jax.lax.dot_general(cast(attn), cast(vh),
                              (((2,), (1,)), ((0,), (0,))),
                              preferred_element_type=f32)             # (NH, TQ, hd)
    ctx_flat = ctx.transpose(1, 0, 2).reshape(tq, nh * hd)            # (TQ, H)
    out = (jnp.dot(cast(ctx_flat), cast(wo_ref[...]),
                   preferred_element_type=f32) + bo_ref[...])
    out_ref[0] = out.astype(out_ref.dtype)


def pack_params(params):
    """Repack PyTorch-style Linear params ONCE (callers should cache this).

    nn.Linear stores weight as (out, in); the kernel wants (in, out) so every
    projection is a plain full-width x @ W matmul.
    """
    return {
        "wq": jnp.asarray(params["wq"]).T,
        "wk": jnp.asarray(params["wk"]).T,
        "wv": jnp.asarray(params["wv"]).T,
        "wo": jnp.asarray(params["wo"]).T,
        "bq": jnp.asarray(params["bq"]).reshape(1, -1),
        "bk": jnp.asarray(params["bk"]).reshape(1, -1),
        "bv": jnp.asarray(params["bv"]).reshape(1, -1),
        "bo": jnp.asarray(params["bo"]).reshape(1, -1),
    }


def _pick_query_tile(seq_len, max_tile=512):
    """Largest multiple-of-8 divisor of seq_len that is <= max_tile."""
    if seq_len <= max_tile:
        return seq_len
    for tq in range(max_tile - max_tile % 8, 7, -8):
        if seq_len % tq == 0:
            return tq
    return seq_len  # no clean divisor: fall back to one full-S tile


def _vmem_limit_bytes(est_bytes):
    """Generation-aware scoped-VMEM request (None = keep compiler default)."""
    if est_bytes <= 16 * 1024 * 1024:       # fits the smallest default scoped limit
        return None
    try:
        cap = int(pltpu.get_tpu_info().vmem_capacity_bytes)   # 64 MiB/TC on v7x
    except Exception:
        cap = 64 * 1024 * 1024                                 # conservative fallback
    return min(int(est_bytes * 1.25), int(cap * 3 // 4))       # leave headroom


def _invariant_spec(block_shape, index_map):
    """Grid-invariant block: single-buffered (no point double-buffering)."""
    try:
        return pl.BlockSpec(block_shape, index_map, pipeline_mode=pl.Buffered(1))
    except TypeError:
        return pl.BlockSpec(block_shape, index_map)


def multi_head_attention(query, key, value, params, n_heads, *,
                         matmul_dtype=jnp.float32, return_attn=True,
                         params_packed=False):
    """Pallas forward matching MultiHeadAttention.forward (mask=None, eval).

    matmul_dtype: jnp.float32 (default, strict numerics) or jnp.bfloat16
    (opt-in fast mode for v6e/v7x MXUs; f32 accumulation + exact f32 softmax).
    return_attn=False skips the (B, NH, S, S) attention writeback.
    """
    B, S, H = query.shape
    NH = n_heads
    hd = H // NH
    p = params if params_packed else pack_params(params)

    TQ = _pick_query_tile(S)
    NQ = S // TQ

    kernel = functools.partial(mha_kernel, n_heads=NH, head_dim=hd,
                               matmul_dtype=matmul_dtype,
                               return_attn=return_attn)

    w_spec = _invariant_spec((H, H), lambda b, qi: (0, 0))
    b_spec = _invariant_spec((1, H), lambda b, qi: (0, 0))
    q_spec = pl.BlockSpec((1, TQ, H), lambda b, qi: (b, qi, 0))
    kv_spec = pl.BlockSpec((1, S, H), lambda b, qi: (b, 0, 0))
    out_spec = pl.BlockSpec((1, TQ, H), lambda b, qi: (b, qi, 0))

    out_shapes = [jax.ShapeDtypeStruct((B, S, H), query.dtype)]
    out_specs = [out_spec]
    if return_attn:
        out_shapes.append(jax.ShapeDtypeStruct((B, NH, S, S), jnp.float32))
        out_specs.append(pl.BlockSpec((1, NH, TQ, S),
                                      lambda b, qi: (b, 0, qi, 0)))

    # Rough per-step VMEM budget -> generation-aware scoped limit.
    f32b, xb = 4, query.dtype.itemsize
    est = ((4 * H * H + 4 * H) * f32b                 # weights/biases (1-buffered)
           + 2 * (TQ + 2 * S) * H * xb                # q / k / v input blocks
           + 2 * TQ * H * xb                          # out block
           + (2 * NH * TQ * S * f32b if return_attn else 0)
           + 2 * S * H * f32b                         # K/V projection scratch
           + (3 * NH * TQ * S + 6 * TQ * H + 4 * S * H) * f32b)  # live temporaries
    vmem_limit = _vmem_limit_bytes(est)

    results = pl.pallas_call(
        kernel,
        out_shape=tuple(out_shapes),
        grid_spec=pltpu.PrefetchScalarGridSpec(
            num_scalar_prefetch=0,
            grid=(B, NQ),
            in_specs=[q_spec, kv_spec, kv_spec,
                      w_spec, w_spec, w_spec, w_spec,
                      b_spec, b_spec, b_spec, b_spec],
            out_specs=out_specs,
            scratch_shapes=[pltpu.VMEM((S, H), jnp.float32),   # K projection
                            pltpu.VMEM((S, H), jnp.float32)],  # V projection
        ),
        # Batch steps are independent ("parallel" -> v7x megacore sharding);
        # the query-tile axis is "arbitrary" so the per-batch K/V-projection
        # scratch (computed at qi == 0) is valid.
        compiler_params=pltpu.CompilerParams(
            dimension_semantics=("parallel", "arbitrary"),
            vmem_limit_bytes=vmem_limit),
    )(query, key, value,
      p["wq"], p["wk"], p["wv"], p["wo"],
      p["bq"], p["bk"], p["bv"], p["bo"])

    if return_attn:
        out, attn = results
        return out, attn
    return results[0]


def reference_mha(query, key, value, params, n_heads):
    """Pure-JAX mirror of the PyTorch forward (mask=None, dropout=eval)."""
    B, S, H = query.shape
    hd = H // n_heads
    lin = lambda x, w, b: x @ w.T + b
    split = lambda x: x.reshape(B, S, n_heads, hd).transpose(0, 2, 1, 3)
    Q = split(lin(query, params["wq"], params["bq"]))
    K = split(lin(key, params["wk"], params["bk"]))
    V = split(lin(value, params["wv"], params["bv"]))
    energy = jnp.einsum("bhqd,bhkd->bhqk", Q, K) / jnp.sqrt(jnp.float32(hd))
    attn = jax.nn.softmax(energy, axis=-1)
    x = jnp.einsum("bhqk,bhkd->bhqd", attn, V)
    x = x.transpose(0, 2, 1, 3).reshape(B, S, H)
    return lin(x, params["wo"], params["bo"]), attn


if __name__ == "__main__":
    # Small deterministic config: hid_dim=128, n_heads=4 -> head_dim=32.
    B, S, H, NH = 2, 8, 128, 4

    root = jax.random.PRNGKey(0)
    keys = jax.random.split(root, 11)
    params = {
        "wq": 0.05 * jax.random.normal(keys[0], (H, H), jnp.float32),
        "wk": 0.05 * jax.random.normal(keys[1], (H, H), jnp.float32),
        "wv": 0.05 * jax.random.normal(keys[2], (H, H), jnp.float32),
        "wo": 0.05 * jax.random.normal(keys[3], (H, H), jnp.float32),
        "bq": 0.01 * jax.random.normal(keys[4], (H,), jnp.float32),
        "bk": 0.01 * jax.random.normal(keys[5], (H,), jnp.float32),
        "bv": 0.01 * jax.random.normal(keys[6], (H,), jnp.float32),
        "bo": 0.01 * jax.random.normal(keys[7], (H,), jnp.float32),
    }
    query = jax.random.normal(keys[8], (B, S, H), jnp.float32)
    key_in = jax.random.normal(keys[9], (B, S, H), jnp.float32)
    value = jax.random.normal(keys[10], (B, S, H), jnp.float32)

    # Pack once (hoisted out of the per-call path; cache in real deployments).
    packed = pack_params(params)

    # Strict f32 path (default).
    out, attn = multi_head_attention(query, key_in, value, packed, NH,
                                     params_packed=True)
    out = jax.block_until_ready(out)
    attn = jax.block_until_ready(attn)

    ref_out, ref_attn = reference_mha(query, key_in, value, params, NH)
    assert out.shape == (B, S, H) and attn.shape == (B, NH, S, S)
    assert np.allclose(np.asarray(out), np.asarray(ref_out), atol=1e-4, rtol=1e-4)
    assert np.allclose(np.asarray(attn), np.asarray(ref_attn), atol=1e-5, rtol=1e-4)

    # Opt-in bf16-MXU fast mode (f32 accumulation / f32 softmax): looser tols.
    out_bf, attn_bf = multi_head_attention(query, key_in, value, packed, NH,
                                           params_packed=True,
                                           matmul_dtype=jnp.bfloat16)
    out_bf = jax.block_until_ready(out_bf)
    attn_bf = jax.block_until_ready(attn_bf)
    assert np.allclose(np.asarray(out_bf), np.asarray(ref_out),
                       atol=5e-2, rtol=5e-2)
    assert np.allclose(np.asarray(attn_bf), np.asarray(ref_attn),
                       atol=2e-2, rtol=2e-2)

    print("KERNEL_OK")
</pallas_src>

<mosaic_0001>
module attributes {stable_mosaic.version = 11 : i64} {
  func.func @mha_kernel(%arg0: i32, %arg1: i32, %arg2: memref<1x8x128xf32, #tpu.memory_space<vmem>>, %arg3: memref<1x8x128xf32, #tpu.memory_space<vmem>>, %arg4: memref<1x8x128xf32, #tpu.memory_space<vmem>>, %arg5: memref<128x128xf32, #tpu.memory_space<vmem>>, %arg6: memref<128x128xf32, #tpu.memory_space<vmem>>, %arg7: memref<128x128xf32, #tpu.memory_space<vmem>>, %arg8: memref<128x128xf32, #tpu.memory_space<vmem>>, %arg9: memref<1x128xf32, #tpu.memory_space<vmem>>, %arg10: memref<1x128xf32, #tpu.memory_space<vmem>>, %arg11: memref<1x128xf32, #tpu.memory_space<vmem>>, %arg12: memref<1x128xf32, #tpu.memory_space<vmem>>, %arg13: memref<1x8x128xf32, #tpu.memory_space<vmem>>, %arg14: memref<1x4x8x8xf32, #tpu.memory_space<vmem>>, %arg15: memref<8x128xf32, #tpu.memory_space<vmem>>, %arg16: memref<8x128xf32, #tpu.memory_space<vmem>>) attributes {dimension_semantics = [#tpu.dimension_semantics<parallel>, #tpu.dimension_semantics<arbitrary>], iteration_bounds = array<i64: 2, 1>, scalar_prefetch = 0 : i64, scratch_operands = 2 : i64, tpu.core_type = #tpu.core_type<tc>, window_params = [{transform_indices = @transform_0, window_bounds = array<i64: 1, 8, 128>}, {transform_indices = @transform_1, window_bounds = array<i64: 1, 8, 128>}, {transform_indices = @transform_2, window_bounds = array<i64: 1, 8, 128>}, {pipeline_mode = #tpu.pipeline_mode<synchronous>, transform_indices = @transform_3, window_bounds = array<i64: 128, 128>}, {pipeline_mode = #tpu.pipeline_mode<synchronous>, transform_indices = @transform_4, window_bounds = array<i64: 128, 128>}, {pipeline_mode = #tpu.pipeline_mode<synchronous>, transform_indices = @transform_5, window_bounds = array<i64: 128, 128>}, {pipeline_mode = #tpu.pipeline_mode<synchronous>, transform_indices = @transform_6, window_bounds = array<i64: 128, 128>}, {pipeline_mode = #tpu.pipeline_mode<synchronous>, transform_indices = @transform_7, window_bounds = array<i64: 1, 128>}, {pipeline_mode = #tpu.pipeline_mode<synchronous>, transform_indices = @transform_8, window_bounds = array<i64: 1, 128>}, {pipeline_mode = #tpu.pipeline_mode<synchronous>, transform_indices = @transform_9, window_bounds = array<i64: 1, 128>}, {pipeline_mode = #tpu.pipeline_mode<synchronous>, transform_indices = @transform_10, window_bounds = array<i64: 1, 128>}, {transform_indices = @transform_11, window_bounds = array<i64: 1, 8, 128>}, {transform_indices = @transform_12, window_bounds = array<i64: 1, 4, 8, 8>}]} {
    %c0_i32 = arith.constant 0 : i32
    %0 = arith.cmpi eq, %arg1, %c0_i32 : i32
    %1 = arith.extui %0 : i1 to i32
    %c0_i32_0 = arith.constant 0 : i32
    %2 = arith.cmpi ne, %1, %c0_i32_0 : i32
    scf.if %2 {
      %c0_28 = arith.constant 0 : index
      %c0_29 = arith.constant 0 : index
      %c0_30 = arith.constant 0 : index
      %44 = vector.load %arg3[%c0_28, %c0_29, %c0_30] : memref<1x8x128xf32, #tpu.memory_space<vmem>>, vector<1x8x128xf32>
      %45 = vector.shape_cast %44 : vector<1x8x128xf32> to vector<8x128xf32>
      %c0_31 = arith.constant 0 : index
      %c0_32 = arith.constant 0 : index
      %c0_33 = arith.constant 0 : index
      %46 = vector.load %arg4[%c0_31, %c0_32, %c0_33] : memref<1x8x128xf32, #tpu.memory_space<vmem>>, vector<1x8x128xf32>
      %47 = vector.shape_cast %46 : vector<1x8x128xf32> to vector<8x128xf32>
      %c0_34 = arith.constant 0 : index
      %c0_35 = arith.constant 0 : index
      %48 = vector.load %arg6[%c0_34, %c0_35] : memref<128x128xf32, #tpu.memory_space<vmem>>, vector<128x128xf32>
      %cst_36 = arith.constant dense<0.000000e+00> : vector<8x128xf32>
      %49 = tpu.matmul %45, %48, %cst_36 {dimension_numbers = #tpu.dot_dimension_numbers<[1], [0], [0], [1], [0, 0, 1, 1], [], []>} : vector<8x128xf32>, vector<128x128xf32>, vector<8x128xf32> -> vector<8x128xf32>
      %c0_37 = arith.constant 0 : index
      %c0_38 = arith.constant 0 : index
      %50 = vector.load %arg10[%c0_37, %c0_38] : memref<1x128xf32, #tpu.memory_space<vmem>>, vector<1x128xf32>
      %51 = vector.broadcast %50 : vector<1x128xf32> to vector<8x128xf32>
      %52 = arith.addf %49, %51 : vector<8x128xf32>
      %c0_39 = arith.constant 0 : index
      %c0_40 = arith.constant 0 : index
      %53 = vector.load %arg15[%c0_39, %c0_40] : memref<8x128xf32, #tpu.memory_space<vmem>>, vector<8x128xf32>
      tpu.vector_store %arg15[%c0_39, %c0_40], %52 {strides = array<i32>} : memref<8x128xf32, #tpu.memory_space<vmem>>, vector<8x128xf32>,
      %c0_41 = arith.constant 0 : index
      %c0_42 = arith.constant 0 : index
      %54 = vector.load %arg7[%c0_41, %c0_42] : memref<128x128xf32, #tpu.memory_space<vmem>>, vector<128x128xf32>
      %cst_43 = arith.constant dense<0.000000e+00> : vector<8x128xf32>
      %55 = tpu.matmul %47, %54, %cst_43 {dimension_numbers = #tpu.dot_dimension_numbers<[1], [0], [0], [1], [0, 0, 1, 1], [], []>} : vector<8x128xf32>, vector<128x128xf32>, vector<8x128xf32> -> vector<8x128xf32>
      %c0_44 = arith.constant 0 : index
      %c0_45 = arith.constant 0 : index
      %56 = vector.load %arg11[%c0_44, %c0_45] : memref<1x128xf32, #tpu.memory_space<vmem>>, vector<1x128xf32>
      %57 = vector.broadcast %56 : vector<1x128xf32> to vector<8x128xf32>
      %58 = arith.addf %55, %57 : vector<8x128xf32>
      %c0_46 = arith.constant 0 : index
      %c0_47 = arith.constant 0 : index
      %59 = vector.load %arg16[%c0_46, %c0_47] : memref<8x128xf32, #tpu.memory_space<vmem>>, vector<8x128xf32>
      tpu.vector_store %arg16[%c0_46, %c0_47], %58 {strides = array<i32>} : memref<8x128xf32, #tpu.memory_space<vmem>>, vector<8x128xf32>,
    } else {
    }
    %c0 = arith.constant 0 : index
    %c0_1 = arith.constant 0 : index
    %c0_2 = arith.constant 0 : index
    %3 = vector.load %arg2[%c0, %c0_1, %c0_2] : memref<1x8x128xf32, #tpu.memory_space<vmem>>, vector<1x8x128xf32>
    %4 = vector.shape_cast %3 : vector<1x8x128xf32> to vector<8x128xf32>
    %c0_3 = arith.constant 0 : index
    %c0_4 = arith.constant 0 : index
    %5 = vector.load %arg5[%c0_3, %c0_4] : memref<128x128xf32, #tpu.memory_space<vmem>>, vector<128x128xf32>
    %cst = arith.constant dense<0.000000e+00> : vector<8x128xf32>
    %6 = tpu.matmul %4, %5, %cst {dimension_numbers = #tpu.dot_dimension_numbers<[1], [0], [0], [1], [0, 0, 1, 1], [], []>} : vector<8x128xf32>, vector<128x128xf32>, vector<8x128xf32> -> vector<8x128xf32>
    %c0_5 = arith.constant 0 : index
    %c0_6 = arith.constant 0 : index
    %7 = vector.load %arg9[%c0_5, %c0_6] : memref<1x128xf32, #tpu.memory_space<vmem>>, vector<1x128xf32>
    %8 = vector.broadcast %7 : vector<1x128xf32> to vector<8x128xf32>
    %9 = arith.addf %6, %8 : vector<8x128xf32>
    %cst_7 = arith.constant 0.176776692 : f32
    %10 = vector.broadcast %cst_7 : f32 to vector<8x128xf32>
    %11 = arith.mulf %9, %10 : vector<8x128xf32>
    %12 = vector.shape_cast %11 : vector<8x128xf32> to vector<8x4x32xf32>
    %13 = tpu.transpose %12, [1, 0, 2] : vector<8x4x32xf32> -> vector<4x8x32xf32>
    %c0_8 = arith.constant 0 : index
    %c0_9 = arith.constant 0 : index
    %14 = vector.load %arg15[%c0_8, %c0_9] : memref<8x128xf32, #tpu.memory_space<vmem>>, vector<8x128xf32>
    %15 = vector.shape_cast %14 : vector<8x128xf32> to vector<8x4x32xf32>
    %16 = tpu.transpose %15, [1, 0, 2] : vector<8x4x32xf32> -> vector<4x8x32xf32>
    %c0_10 = arith.constant 0 : index
    %c0_11 = arith.constant 0 : index
    %17 = vector.load %arg16[%c0_10, %c0_11] : memref<8x128xf32, #tpu.memory_space<vmem>>, vector<8x128xf32>
    %18 = vector.shape_cast %17 : vector<8x128xf32> to vector<8x4x32xf32>
    %19 = tpu.transpose %18, [1, 0, 2] : vector<8x4x32xf32> -> vector<4x8x32xf32>
    %cst_12 = arith.constant dense<0.000000e+00> : vector<4x8x8xf32>
    %20 = tpu.matmul %13, %16, %cst_12 {dimension_numbers = #tpu.dot_dimension_numbers<[2], [2], [1], [1], [0, 0, 0, 1, 1, 1], [0], [0]>} : vector<4x8x32xf32>, vector<4x8x32xf32>, vector<4x8x8xf32> -> vector<4x8x8xf32>
    %cst_13 = arith.constant dense<0xFF800000> : vector<4x8xf32>
    %21 = vector.multi_reduction <maximumf>, %20, %cst_13 [2] : vector<4x8x8xf32> to vector<4x8xf32>
    %22 = vector.shape_cast %21 : vector<4x8xf32> to vector<4x8x1xf32>
    %23 = vector.broadcast %22 : vector<4x8x1xf32> to vector<4x8x8xf32>
    %24 = arith.subf %20, %23 : vector<4x8x8xf32>
    %25 = math.exp %24 : vector<4x8x8xf32>
    %cst_14 = arith.constant dense<0.000000e+00> : vector<4x8xf32>
    %26 = vector.multi_reduction <add>, %25, %cst_14 [2] : vector<4x8x8xf32> to vector<4x8xf32>
    %27 = vector.shape_cast %26 : vector<4x8xf32> to vector<4x8x1xf32>
    %28 = vector.broadcast %27 : vector<4x8x1xf32> to vector<4x8x8xf32>
    %29 = arith.divf %25, %28 : vector<4x8x8xf32>
    %c0_15 = arith.constant 0 : index
    %c0_16 = arith.constant 0 : index
    %c0_17 = arith.constant 0 : index
    %c0_18 = arith.constant 0 : index
    %30 = vector.load %arg14[%c0_15, %c0_16, %c0_17, %c0_18] : memref<1x4x8x8xf32, #tpu.memory_space<vmem>>, vector<1x4x8x8xf32>
    %31 = vector.shape_cast %30 : vector<1x4x8x8xf32> to vector<4x8x8xf32>
    %32 = vector.shape_cast %29 : vector<4x8x8xf32> to vector<1x4x8x8xf32>
    tpu.vector_store %arg14[%c0_15, %c0_16, %c0_17, %c0_18], %32 {strides = array<i32>} : memref<1x4x8x8xf32, #tpu.memory_space<vmem>>, vector<1x4x8x8xf32>,
    %cst_19 = arith.constant dense<0.000000e+00> : vector<4x8x32xf32>
    %33 = tpu.matmul %29, %19, %cst_19 {dimension_numbers = #tpu.dot_dimension_numbers<[2], [1], [1], [2], [0, 0, 0, 1, 1, 2], [0], [0]>} : vector<4x8x8xf32>, vector<4x8x32xf32>, vector<4x8x32xf32> -> vector<4x8x32xf32>
    %34 = tpu.transpose %33, [1, 0, 2] : vector<4x8x32xf32> -> vector<8x4x32xf32>
    %35 = vector.shape_cast %34 : vector<8x4x32xf32> to vector<8x128xf32>
    %c0_20 = arith.constant 0 : index
    %c0_21 = arith.constant 0 : index
    %36 = vector.load %arg8[%c0_20, %c0_21] : memref<128x128xf32, #tpu.memory_space<vmem>>, vector<128x128xf32>
    %cst_22 = arith.constant dense<0.000000e+00> : vector<8x128xf32>
    %37 = tpu.matmul %35, %36, %cst_22 {dimension_numbers = #tpu.dot_dimension_numbers<[1], [0], [0], [1], [0, 0, 1, 1], [], []>} : vector<8x128xf32>, vector<128x128xf32>, vector<8x128xf32> -> vector<8x128xf32>
    %c0_23 = arith.constant 0 : index
    %c0_24 = arith.constant 0 : index
    %38 = vector.load %arg12[%c0_23, %c0_24] : memref<1x128xf32, #tpu.memory_space<vmem>>, vector<1x128xf32>
    %39 = vector.broadcast %38 : vector<1x128xf32> to vector<8x128xf32>
    %40 = arith.addf %37, %39 : vector<8x128xf32>
    %c0_25 = arith.constant 0 : index
    %c0_26 = arith.constant 0 : index
    %c0_27 = arith.constant 0 : index
    %41 = vector.load %arg13[%c0_25, %c0_26, %c0_27] : memref<1x8x128xf32, #tpu.memory_space<vmem>>, vector<1x8x128xf32>
    %42 = vector.shape_cast %41 : vector<1x8x128xf32> to vector<8x128xf32>
    %43 = vector.shape_cast %40 : vector<8x128xf32> to vector<1x8x128xf32>
    tpu.vector_store %arg13[%c0_25, %c0_26, %c0_27], %43 {strides = array<i32>} : memref<1x8x128xf32, #tpu.memory_space<vmem>>, vector<1x8x128xf32>,
    return
  }
  func.func @transform_0(%arg0: i32, %arg1: i32) -> (i32, i32, i32) {
    %c0_i32 = arith.constant 0 : i32
    %c0_i32_0 = arith.constant 0 : i32
    return %arg0, %arg1, %c0_i32 : i32, i32, i32
  }
  func.func @transform_1(%arg0: i32, %arg1: i32) -> (i32, i32, i32) {
    %c0_i32 = arith.constant 0 : i32
    %c0_i32_0 = arith.constant 0 : i32
    %c0_i32_1 = arith.constant 0 : i32
    return %arg0, %c0_i32, %c0_i32_0 : i32, i32, i32
  }
  func.func @transform_2(%arg0: i32, %arg1: i32) -> (i32, i32, i32) {
    %c0_i32 = arith.constant 0 : i32
    %c0_i32_0 = arith.constant 0 : i32
    %c0_i32_1 = arith.constant 0 : i32
    return %arg0, %c0_i32, %c0_i32_0 : i32, i32, i32
  }
  func.func @transform_3(%arg0: i32, %arg1: i32) -> (i32, i32) {
    %c0_i32 = arith.constant 0 : i32
    %c0_i32_0 = arith.constant 0 : i32
    %c0_i32_1 = arith.constant 0 : i32
    return %c0_i32, %c0_i32_0 : i32, i32
  }
  func.func @transform_4(%arg0: i32, %arg1: i32) -> (i32, i32) {
    %c0_i32 = arith.constant 0 : i32
    %c0_i32_0 = arith.constant 0 : i32
    %c0_i32_1 = arith.constant 0 : i32
    return %c0_i32, %c0_i32_0 : i32, i32
  }
  func.func @transform_5(%arg0: i32, %arg1: i32) -> (i32, i32) {
    %c0_i32 = arith.constant 0 : i32
    %c0_i32_0 = arith.constant 0 : i32
    %c0_i32_1 = arith.constant 0 : i32
    return %c0_i32, %c0_i32_0 : i32, i32
  }
  func.func @transform_6(%arg0: i32, %arg1: i32) -> (i32, i32) {
    %c0_i32 = arith.constant 0 : i32
    %c0_i32_0 = arith.constant 0 : i32
    %c0_i32_1 = arith.constant 0 : i32
    return %c0_i32, %c0_i32_0 : i32, i32
  }
  func.func @transform_7(%arg0: i32, %arg1: i32) -> (i32, i32) {
    %c0_i32 = arith.constant 0 : i32
    %c0_i32_0 = arith.constant 0 : i32
    %c0_i32_1 = arith.constant 0 : i32
    return %c0_i32, %c0_i32_0 : i32, i32
  }
  func.func @transform_8(%arg0: i32, %arg1: i32) -> (i32, i32) {
    %c0_i32 = arith.constant 0 : i32
    %c0_i32_0 = arith.constant 0 : i32
    %c0_i32_1 = arith.constant 0 : i32
    return %c0_i32, %c0_i32_0 : i32, i32
  }
  func.func @transform_9(%arg0: i32, %arg1: i32) -> (i32, i32) {
    %c0_i32 = arith.constant 0 : i32
    %c0_i32_0 = arith.constant 0 : i32
    %c0_i32_1 = arith.constant 0 : i32
    return %c0_i32, %c0_i32_0 : i32, i32
  }
  func.func @transform_10(%arg0: i32, %arg1: i32) -> (i32, i32) {
    %c0_i32 = arith.constant 0 : i32
    %c0_i32_0 = arith.constant 0 : i32
    %c0_i32_1 = arith.constant 0 : i32
    return %c0_i32, %c0_i32_0 : i32, i32
  }
  func.func @transform_11(%arg0: i32, %arg1: i32) -> (i32, i32, i32) {
    %c0_i32 = arith.constant 0 : i32
    %c0_i32_0 = arith.constant 0 : i32
    return %arg0, %arg1, %c0_i32 : i32, i32, i32
  }
  func.func @transform_12(%arg0: i32, %arg1: i32) -> (i32, i32, i32, i32) {
    %c0_i32 = arith.constant 0 : i32
    %c0_i32_0 = arith.constant 0 : i32
    %c0_i32_1 = arith.constant 0 : i32
    return %arg0, %c0_i32, %arg1, %c0_i32_0 : i32, i32, i32, i32
  }
}

</mosaic_0001>

<bundles_post_ra>
// kernel: tpu_custom_call.1
= control target key start
LH: loop header
LB: loop body
LE: loop exit
PB: predicated region body
PF: predicated region fallthrough
CT: control target
= control target key end

     0   :  { %s4037_s0 = inlined_call_operand.hbm [shape: f32[2,8,128], index: 0, kind: input, shape index: {}]   ;;  %s4038_s1 = inlined_call_operand.hbm [shape: f32[2,8,128], index: 1, kind: input, shape index: {}]   ;;  %s4039_s2 = inlined_call_operand.hbm [shape: f32[2,8,128], index: 2, kind: input, shape index: {}]   ;;  %s4040_s3 = inlined_call_operand.hbm [shape: f32[128,128], index: 3, kind: input, shape index: {}]   ;;  %s4041_s4 = inlined_call_operand.hbm [shape: f32[128,128], index: 4, kind: input, shape index: {}]   ;;  %s4042_s5 = inlined_call_operand.hbm [shape: f32[128,128], index: 5, kind: input, shape index: {}]   ;;  %s4043_s6 = inlined_call_operand.hbm [shape: f32[128,128], index: 6, kind: input, shape index: {}]   ;;  %s4044_s7 = inlined_call_operand.vmem [shape: f32[1,128], index: 7, kind: input, shape index: {}]   ;;  %s4045_s8 = inlined_call_operand.vmem [shape: f32[1,128], index: 8, kind: input, shape index: {}]   ;;  %s4046_s9 = inlined_call_operand.vmem [shape: f32[1,128], index: 9, kind: input, shape index: {}]   ;;  %s4047_s10 = inlined_call_operand.vmem [shape: f32[1,128], index: 10, kind: input, shape index: {}]   ;;  %s4048_s11 = inlined_call_operand.hbm [shape: f32[2,8,128], index: 11, kind: output, shape index: {0}]   ;;  %s4049_s12 = inlined_call_operand.hbm [shape: f32[2,4,8,8], index: 12, kind: output, shape index: {1}]  }
   0x1   :  { %4078 = sst [smem:[#allocation33_spill]] %s4038_s1 }
   0x2   :  { %4079 = sst [smem:[#allocation34_spill]] %s4040_s3 }
   0x3   :  { %4080 = sst [smem:[#allocation35_spill]] %s4042_s5 }
   0x4   :  { %4081 = sst [smem:[#allocation36_spill]] %s4046_s9 }
   0x5   :  { %4082 = sst [smem:[#allocation37_spill]] %s4047_s10 }
   0x6   :  { %4083 = sst [smem:[#allocation38_spill]] %s4048_s11 }
   0x7   :  { %4084 = sst [smem:[#allocation39_spill]] %s4049_s12 }
   0x8   :  { %18 = vsyncpa [#allocation5], 0 }
   0x9   :  { %20 = vsyncpa [#allocation5 + $0x1], 0 }
   0xa   :  { %21 = vsyncpa [#allocation8], 0 }
   0xb   :  { %23 = vsyncpa [#allocation8 + $0x1], 0 }
   0xc   :  { %24 = vsyncpa [#allocation11], 0 }
   0xd   :  { %25 = vsyncpa [#allocation14], 0 }
   0xe   :  { %26 = vsyncpa [#allocation6], 0 }
   0xf   :  { %28 = vsyncpa [#allocation6 + $0x1], 0 }
  0x10   :  { %29 = vsyncpa [#allocation18], 0 }
  0x11   :  { %31 = vsyncpa [#allocation18 + $0x1], 0  ;;  %s3420_s21 = smov 0   ;;  %s3422_s22 = smov 0  }
  0x12   :  { %s3424_s23 = smov 0   ;;  %s3426_s24 = smov 0  }
  0x13   :  { %s3428_s25 = smov 0   ;;  %s3430_s26 = smov 0  }
  0x14 LB: > { %4085 = sst [smem:[#allocation25_spill]] %s3312_s21  ;;  %s3451_s27 = sadd.s32 4294967295, %s3332_s26   ;;  %s3332_s26 = sphi %s3430_s26, %s37_s26   ;;  %s3328_s25 = sphi %s3428_s25, %s4133_s25   ;;  %s3324_s24 = sphi %s3426_s24, %s4132_s24   ;;  %s3320_s23 = sphi %s3424_s23, %s4136_s23   ;;  %s3316_s22 = sphi %s3422_s22, %s4135_s22   ;;  %s3312_s21 = sphi %s3420_s21, %s4134_s21  }
  0x15   : > { %4086 = sst [smem:[#allocation26_spill]] %s3324_s24  ;;  %p2444_p0 = scmp.ge.s32.totalorder %s3332_s26, 1 }
  0x16   : > { %4087 = sst [smem:[#allocation27_spill]] %s3328_s25  ;;  %p4062_p1 = scmp.eq.s32.totalorder %s3451_s27, 0 }
  0x17   : > { %4088 = sst [smem:[#allocation28_spill]] %s3332_s26  ;;  %p358_p2 = scmp.lt.s32.totalorder %s3332_s26, 3 }
  0x18   : > { %s3334_s29 = smov [#allocation10]   ;;  %s3335_s14 = smov [#allocation13]  }
  0x19   : > { %p3456_p3 = pnand %p2444_p0, %p358_p2  ;;  %s370_s30 = sshll.u32 %s3334_s29, 4  ;;  %s3460_s30 = int_to_ptr.vmem [resolvable:$true] %s370_s30 }
  0x1a   : > { %s396_s15 = sshll.u32 %s3335_s14, 4  ;;  %s4091_s3 = sld [smem:[#allocation34_spill]]  ;;  %s3471_s15 = int_to_ptr.vmem [resolvable:$true] %s396_s15 }
  0x1b   : > { %s4089_s28 = scalar_select %p3456_p3, 1, 0 }
  0x1c   : > { %p2884_p4 = pneg %p3456_p3 }
  0x1e   : > { %p3467_p6 = pnand %p2884_p4, %p4062_p1 }
  0x20   : > { %s4090_s13 = scalar_select %p3467_p6, 1, 0 }
  0x21   : > { %s3004_s18 = scalar_lea.hbm %s4091_s3, 2048  ;;  %p3481_p8 = pneg %p3467_p6 }
  0x22   : > { %p3005_p7 = scmp.ne.s32.totalorder %s4091_s3, %s3004_s18  ;;  %p3011_p11 = scmp.lt.u32.totalorder %s3004_s18, %s4091_s3 }
  0x23   : > { %s4092_s29 = scalar_select %p3481_p8, 1, 0 }
  0x24   : > { %p3007_p9 = pnand %p3481_p8, %p3005_p7 }
  0x26   : > { %p3008_p10 = pneg %p3007_p9 }
  0x28   : > { %p3013_p12 = pnand %p3011_p11, %p3008_p10 }
  0x2a   : > { %3016 = shalt.err (!%p3013_p12)
}
  0x2b   : > { %s3017_s16 = scalar_lea.vmem %s3460_s30, 2048  ;;  %p3025_p4 = scmp.lt.s32.totalorder %s3460_s30, %s3460_s30 }
  0x2c   : > { %p3018_p13 = scmp.ne.s32.totalorder %s3460_s30, %s3017_s16  ;;  %p3026_p5 = scmp.lt.s32.totalorder %s3017_s16, %s3017_s16 }
  0x2e   : > { %p3020_p0 = pnand %p3018_p13, %p3481_p8  ;;  %p3027_p7 = por %p3026_p5, %p3025_p4 }
  0x30   : > { %p3021_p2 = pneg %p3020_p0 }
  0x32   : > { %p3028_p9 = pnand %p3027_p7, %p3021_p2 }
  0x34   : > { %3031 = shalt.err (!%p3028_p9)
}
  0x35   : > { %s4053_s17 = smov 128   ;;  %s4055_s11 = smov 8  }
  0x36   : > { %2887 = dma.hbm_to_vmem [thread:$0]  (!%p3467_p6), %s4091_s3, 2048, %s3460_s30, [#allocation11], %s4053_s17, %s4053_s17, %s4055_s11  }
  0x37   : > { %s4093_s5 = sld [smem:[#allocation35_spill]] }
  0x3d   : > { %s3032_s16 = scalar_lea.hbm %s4093_s5, 2048 }
  0x3e   : > { %p3033_p5 = scmp.ne.s32.totalorder %s4093_s5, %s3032_s16  ;;  %p3039_p12 = scmp.lt.u32.totalorder %s3032_s16, %s4093_s5 }
  0x40   : > { %p3035_p10 = pnand %p3033_p5, %p3481_p8 }
  0x42   : > { %p3036_p11 = pneg %p3035_p10 }
  0x44   : > { %p3041_p13 = pnand %p3039_p12, %p3036_p11 }
  0x46   : > { %3044 = shalt.err (!%p3041_p13)
}
  0x47   : > { %s3045_s30 = scalar_lea.vmem %s3471_s15, 2048  ;;  %p3053_p7 = scmp.lt.s32.totalorder %s3471_s15, %s3471_s15 }
  0x48   : > { %p3046_p0 = scmp.ne.s32.totalorder %s3471_s15, %s3045_s30  ;;  %p3054_p9 = scmp.lt.s32.totalorder %s3045_s30, %s3045_s30 }
  0x4a   : > { %p3048_p2 = pnand %p3046_p0, %p3481_p8  ;;  %p3055_p5 = por %p3054_p9, %p3053_p7 }
  0x4c   : > { %p3049_p4 = pneg %p3048_p2 }
  0x4e   : > { %p3056_p10 = pnand %p3055_p5, %p3049_p4 }
  0x50   : > { %3059 = shalt.err (!%p3056_p10)
}
  0x51   : > { %2893 = dma.hbm_to_vmem [thread:$0]  (!%p3467_p6), %s4093_s5, 2048, %s3471_s15, [#allocation14], %s4053_s17, %s4053_s17, %s4055_s11  }
  0x52   : > { %s2443_s12 = sadd.s32 4294967294, %s3332_s26   ;;  %s49_s24 = sadd.s32 1, %s3328_s25 }
  0x53   : > { %p51_p11 = scmp.ge.s32.totalorder %s49_s24, 2  ;;  %s58_s18 = sadd.s32 1, %s3320_s23 }
  0x54   : > { %p65_p12 = scmp.ne.s32.totalorder %s3320_s23, %s3316_s22  ;;  %p66_p13 = scmp.eq.s32.totalorder %s3332_s26, 0 }
  0x55   : > { %s4138_s24 = smov (%p51_p11, %s49_s24), 0  ;;  %p71_p2 = scmp.ne.s32.totalorder %s3316_s22, %s3312_s21 }
  0x56   : > { %4094 = sst [smem:[#allocation29_spill]] %s4138_s24  ;;  %p3539_p0 = por %p66_p13, %p65_p12 }
  0x57   : > { %s53_s15 = ssub.s32 %s3328_s25, %s4138_s24  ;;  %p317_p4 = scmp.eq.s32.totalorder %s3451_s27, 1 }
  0x58   : > { %p56_p7 = scmp.eq.s32.totalorder %s53_s15, 0  ;;  %p3550_p9 = por %p4062_p1, %p71_p2 }
  0x59   : > { %p3554_p5 = por %p317_p4, %p65_p12  ;;  %p323_p10 = scmp.eq.s32.totalorder %s2443_s12, 1 }
  0x5a   : > { %s4096_s20 = scalar_select %p3550_p9, 1, 0 }
  0x5b   : > { %s4097_s14 = scalar_select %p3554_p5, 1, 0 }
  0x5c   : > { %s3559_s16 = scalar_select %p56_p7, %s3320_s23, %s58_s18  }
  0x5d   : > { %4098 = sst [smem:[#allocation30_spill]] %s4097_s14  ;;  %p3561_p11 = por %p323_p10, %p71_p2 }
  0x5e   : > { %4099 = sst [smem:[#allocation31_spill]] %s3559_s16  ;;  %p2918_p13 = scmp.lt.s32.totalorder %s3332_s26, 2 }
  0x5f   : > { %s4100_s30 = scalar_select %p3561_p11, 1, 0 }
  0x60   : > { %s4057_s9 = sand.u32 1, %s3320_s23   ;;  %s3568_s10 = sshll.u32 %s3328_s25, 7 }
  0x61   : > { %4101 = sst [smem:[#allocation32_spill]] %s4100_s30  ;;  %s3572_s15 = sshll.u32 %s4057_s9, 3 }
  0x62   : > { %p3576_p12 = pnand %p2918_p13, %p3539_p0  ;;  %s454_s12 = sand.u32 1, %s3332_s26  }
  0x63   : > { %s4103_s1 = sld [smem:[#allocation33_spill]]  ;;  %s458_s5 = scalar_lea.vmem [#allocation7], %s3572_s15 }
  0x64   : > { %s4102_s17 = scalar_select %p3576_p12, 1, 0 }
  0x65   : > { %s465_s9 = sshll.u32 %s458_s5, 4  ;;  %s3590_s19 = scalar_lea.sflag [#allocation8], %s454_s12  ;;  %s3588_s9 = int_to_ptr.vmem [resolvable:$true] %s465_s9 }
  0x66   : > { %p3596_p2 = pneg %p3576_p12 }
  0x68   : > { %s4104_s25 = scalar_select %p3596_p2, 1, 0 }
  0x69   : > { %s3585_s3 = scalar_lea.hbm %s4103_s1, %s3568_s10  ;;  %s3065_s16 = scalar_lea.hbm %s4103_s1, 256 }
  0x6a   : > { %s3060_s24 = scalar_lea.hbm %s3585_s3, 128  ;;  %p3066_p10 = scmp.lt.u32.totalorder %s3585_s3, %s4103_s1 }
  0x6b   : > { %p3061_p0 = scmp.ne.s32.totalorder %s3585_s3, %s3060_s24  ;;  %p3067_p13 = scmp.lt.u32.totalorder %s3065_s16, %s3060_s24 }
  0x6c   : > { %p3069_p11 = scmp.lt.u32.totalorder %s3060_s24, %s3585_s3 }
  0x6d   : > { %p3063_p4 = pnand %p3596_p2, %p3061_p0  ;;  %p3068_p1 = por %p3067_p13, %p3066_p10 }
  0x6f   : > { %p3064_p7 = pneg %p3063_p4  ;;  %p3070_p5 = por %p3069_p11, %p3068_p1 }
  0x71   : > { %p3071_p9 = pnand %p3070_p5, %p3064_p7 }
  0x73   : > { %3074 = shalt.err (!%p3071_p9)
}
  0x74   : > { %s3075_s12 = scalar_lea.vmem %s3588_s9, 128  ;;  %s3338_s11 = smov [#allocation7]  }
  0x75   : > { %p3076_p0 = scmp.ne.s32.totalorder %s3588_s9, %s3075_s12  ;;  %s3080_s18 = sshll.u32 %s3338_s11, 4  ;;  %s3081_s18 = int_to_ptr.vmem [resolvable:$false] %s3080_s18 }
  0x76   : > { %s3082_s26 = scalar_lea.vmem %s3081_s18, 256  ;;  %p3083_p6 = scmp.lt.s32.totalorder %s3588_s9, %s3081_s18 }
  0x77   : > { %p3078_p4 = pnand %p3076_p0, %p3596_p2  ;;  %p3084_p8 = scmp.lt.s32.totalorder %s3082_s26, %s3075_s12 }
  0x79   : > { %p3079_p3 = pneg %p3078_p4  ;;  %p3085_p10 = por %p3084_p8, %p3083_p6 }
  0x7b   : > { %p3086_p13 = pnand %p3085_p10, %p3079_p3 }
  0x7d   : > { %3089 = shalt.err (!%p3086_p13)
}
  0x7e   : > { %2903 = dma.hbm_to_vmem [thread:$0]  (!%p3576_p12), %s3585_s3, 128, %s3588_s9, %s3590_s19  }
  0x7f   : > { %s3339_s24 = smov [#allocation12]   ;;  %s3340_s5 = smov [#allocation15]  }
  0x80   : > { %s383_s16 = sshll.u32 %s3339_s24, 4  ;;  %s409_s1 = sshll.u32 %s3340_s5, 4  ;;  %s384_s16 = int_to_ptr.vmem [resolvable:$true] %s383_s16  ;;  %s410_s1 = int_to_ptr.vmem [resolvable:$true] %s409_s1 }
  0x81   : > { %s3090_s18 = scalar_lea.hbm %s4041_s4, 2048  ;;  %p4105_p3 = scmp.ne.s32.totalorder %s4092_s29, 0 }
  0x82   : > { %p3091_p1 = scmp.ne.s32.totalorder %s4041_s4, %s3090_s18  ;;  %p3097_p9 = scmp.lt.u32.totalorder %s3090_s18, %s4041_s4 }
  0x84   : > { %p3093_p6 = pnand %p3091_p1, %p4105_p3 }
  0x86   : > { %p3094_p8 = pneg %p3093_p6 }
  0x88   : > { %p3099_p5 = pnand %p3097_p9, %p3094_p8 }
  0x8a   : > { %3102 = shalt.err (!%p3099_p5)
}
  0x8b   : > { %s3103_s3 = scalar_lea.vmem %s384_s16, 2048  ;;  %p3111_p4 = scmp.lt.s32.totalorder %s384_s16, %s384_s16 }
  0x8c   : > { %p3104_p11 = scmp.ne.s32.totalorder %s384_s16, %s3103_s3  ;;  %p3112_p10 = scmp.lt.s32.totalorder %s3103_s3, %s3103_s3 }
  0x8e   : > { %p3106_p7 = pnand %p3104_p11, %p4105_p3  ;;  %p3113_p13 = por %p3112_p10, %p3111_p4 }
  0x90   : > { %p3107_p0 = pneg %p3106_p7 }
  0x92   : > { %p3114_p12 = pnand %p3113_p13, %p3107_p0 }
  0x94   : > { %3117 = shalt.err (!%p3114_p12)
}
  0x95   : > { %p4106_p1 = scmp.ne.s32.totalorder %s4090_s13, 0  ;;  %s4107_s30 = smov 8  }
  0x96   : > { %s4108_s9 = smov 128   ;;  %s3118_s11 = scalar_lea.hbm %s4043_s6, 2048 }
  0x97   : > { %2890 = dma.hbm_to_vmem [thread:$0]  (!%p4106_p1), %s4041_s4, 2048, %s384_s16, [#allocation11], %s4108_s9, %s4108_s9, %s4107_s30  }
  0x98   : > { %p3119_p6 = scmp.ne.s32.totalorder %s4043_s6, %s3118_s11  ;;  %p3125_p9 = scmp.lt.u32.totalorder %s3118_s11, %s4043_s6 }
  0x9a   : > { %p3121_p12 = pnand %p3119_p6, %p4105_p3 }
  0x9c   : > { %p3122_p8 = pneg %p3121_p12 }
  0x9e   : > { %p3127_p5 = pnand %p3125_p9, %p3122_p8 }
  0xa0   : > { %3130 = shalt.err (!%p3127_p5)
}
  0xa1   : > { %s3131_s21 = scalar_lea.vmem %s410_s1, 2048  ;;  %p3139_p4 = scmp.lt.s32.totalorder %s410_s1, %s410_s1 }
  0xa2   : > { %p3132_p11 = scmp.ne.s32.totalorder %s410_s1, %s3131_s21  ;;  %p3140_p10 = scmp.lt.s32.totalorder %s3131_s21, %s3131_s21 }
  0xa4   : > { %p3134_p7 = pnand %p3132_p11, %p4105_p3  ;;  %p3141_p13 = por %p3140_p10, %p3139_p4 }
  0xa6   : > { %p3135_p0 = pneg %p3134_p7 }
  0xa8   : > { %p3142_p2 = pnand %p3141_p13, %p3135_p0 }
  0xaa   : > { %3145 = shalt.err (!%p3142_p2)
}
  0xab   : > { %2896 = dma.hbm_to_vmem [thread:$0]  (!%p4106_p1), %s4043_s6, 2048, %s410_s1, [#allocation14], %s4108_s9, %s4108_s9, %s4107_s30  }
  0xac   : > { %s3666_s5 = scalar_lea.hbm %s4037_s0, %s3568_s10  ;;  %s439_s13 = scalar_lea.vmem [#allocation4], %s3572_s15 }
  0xad   : > { %s447_s11 = sshll.u32 %s439_s13, 4  ;;  %s3675_s26 = scalar_lea.hbm %s4039_s2, %s3568_s10  ;;  %s3669_s11 = int_to_ptr.vmem [resolvable:$true] %s447_s11 }
  0xae   : > { %s4109_s3 = sand.u32 1, %s3320_s23   ;;  %s3146_s30 = scalar_lea.hbm %s3666_s5, 128 }
  0xaf   : > { %s436_s1 = scalar_lea.sflag [#allocation5], %s4109_s3  ;;  %p3147_p2 = scmp.ne.s32.totalorder %s3666_s5, %s3146_s30 }
  0xb0   : > { %p4110_p3 = scmp.ne.s32.totalorder %s4104_s25, 0  ;;  %s3151_s16 = scalar_lea.hbm %s4037_s0, 256 }
  0xb1   : > { %p3152_p12 = scmp.lt.u32.totalorder %s3666_s5, %s4037_s0  ;;  %p3153_p8 = scmp.lt.u32.totalorder %s3151_s16, %s3146_s30 }
  0xb2   : > { %p3149_p1 = pnand %p3147_p2, %p4110_p3  ;;  %p3155_p5 = scmp.lt.u32.totalorder %s3146_s30, %s3666_s5 }
  0xb3   : > { %p3154_p9 = por %p3153_p8, %p3152_p12 }
  0xb4   : > { %p3150_p6 = pneg %p3149_p1 }
  0xb5   : > { %p3156_p11 = por %p3155_p5, %p3154_p9 }
  0xb7   : > { %p3157_p7 = pnand %p3156_p11, %p3150_p6 }
  0xb9   : > { %3160 = shalt.err (!%p3157_p7)
}
  0xba   : > { %s3161_s10 = scalar_lea.vmem %s3669_s11, 128  ;;  %s3341_s24 = smov [#allocation4]  }
  0xbb   : > { %p3162_p0 = scmp.ne.s32.totalorder %s3669_s11, %s3161_s10  ;;  %s3166_s13 = sshll.u32 %s3341_s24, 4  ;;  %s3167_s13 = int_to_ptr.vmem [resolvable:$false] %s3166_s13 }
  0xbc   : > { %s3168_s18 = scalar_lea.vmem %s3167_s13, 256  ;;  %p3169_p13 = scmp.lt.s32.totalorder %s3669_s11, %s3167_s13 }
  0xbd   : > { %p3164_p4 = pnand %p3162_p0, %p4110_p3  ;;  %p3170_p2 = scmp.lt.s32.totalorder %s3168_s18, %s3161_s10 }
  0xbf   : > { %p3165_p10 = pneg %p3164_p4  ;;  %p3171_p1 = por %p3170_p2, %p3169_p13 }
  0xc1   : > { %p3172_p12 = pnand %p3171_p1, %p3165_p10 }
  0xc3   : > { %3175 = shalt.err (!%p3172_p12)
}
  0xc4   : > { %p4111_p6 = scmp.ne.s32.totalorder %s4102_s17, 0  ;;  %s476_s12 = scalar_lea.vmem [#allocation9], %s3572_s15 }
  0xc5   : > { %s483_s3 = sshll.u32 %s476_s12, 4  ;;  %s3176_s30 = scalar_lea.hbm %s3675_s26, 128  ;;  %s484_s3 = int_to_ptr.vmem [resolvable:$true] %s483_s3 }
  0xc6   : > { %2900 = dma.hbm_to_vmem [thread:$0]  (!%p4111_p6), %s3666_s5, 128, %s3669_s11, %s436_s1  }
  0xc7   : > { %p3177_p8 = scmp.ne.s32.totalorder %s3675_s26, %s3176_s30  ;;  %s3181_s16 = scalar_lea.hbm %s4039_s2, 256 }
  0xc8   : > { %p3182_p11 = scmp.lt.u32.totalorder %s3675_s26, %s4039_s2  ;;  %p3183_p7 = scmp.lt.u32.totalorder %s3181_s16, %s3176_s30 }
  0xc9   : > { %p3179_p9 = pnand %p3177_p8, %p4110_p3  ;;  %p3185_p4 = scmp.lt.u32.totalorder %s3176_s30, %s3675_s26 }
  0xca   : > { %p3184_p0 = por %p3183_p7, %p3182_p11 }
  0xcb   : > { %p3180_p5 = pneg %p3179_p9 }
  0xcc   : > { %p3186_p10 = por %p3185_p4, %p3184_p0 }
  0xce   : > { %p3187_p13 = pnand %p3186_p10, %p3180_p5 }
  0xd0   : > { %3190 = shalt.err (!%p3187_p13)
}
  0xd1   : > { %s3191_s15 = scalar_lea.vmem %s484_s3, 128  ;;  %s3342_s5 = smov [#allocation9]  }
  0xd2   : > { %p3192_p2 = scmp.ne.s32.totalorder %s484_s3, %s3191_s15  ;;  %s3196_s11 = sshll.u32 %s3342_s5, 4  ;;  %s3197_s11 = int_to_ptr.vmem [resolvable:$false] %s3196_s11 }
  0xd3   : > { %s3198_s1 = scalar_lea.vmem %s3197_s11, 256  ;;  %p3199_p8 = scmp.lt.s32.totalorder %s484_s3, %s3197_s11 }
  0xd4   : > { %p3194_p1 = pnand %p3192_p2, %p4110_p3  ;;  %p3200_p9 = scmp.lt.s32.totalorder %s3198_s1, %s3191_s15 }
  0xd6   : > { %p3195_p12 = pneg %p3194_p1  ;;  %p3201_p6 = por %p3200_p9, %p3199_p8 }
  0xd8   : > { %p3202_p7 = pnand %p3201_p6, %p3195_p12 }
  0xda   : > { %3205 = shalt.err (!%p3202_p7)
}
  0xdb   : > { %p4112_p11 = scmp.ne.s32.totalorder %s4102_s17, 0  ;;  %p4113_p5 = scmp.ne.s32.totalorder %s4089_s28, 0 }
  0xdc   : > { %s3722_s25 = sand.u32 (!%p4113_p5), 1, %s3316_s22   ;;  %p4114_p3 = scmp.ne.s32.totalorder (!%p4113_p5), %s4096_s20, 0 }
  0xdd   : > { %2906 = dma.hbm_to_vmem [thread:$0]  (!%p4112_p11), %s3675_s26, 128, %s484_s3, %s3590_s19  }
  0xde   : > { %492 = sbr.rel (%p4113_p5) target bundleno = 1821 (0x71d), region = 64  ;;  %s3725_s10 = sshll.u32 (!%p4113_p5), %s3722_s25, 3 }
  0xdf   : > { %s495_s24 = scalar_lea.sflag (!%p4113_p5), [#allocation5], %s3722_s25  ;;  %s498_s13 = scalar_lea.vmem (!%p4113_p5), [#allocation4], %s3725_s10 }
  0xe5   : > { %3287 = dma.done.wait (%p4114_p3), %s495_s24, 128  }
  0xe6   : > { %3289 = vsyncadd (%p4114_p3), %s495_s24, 4294967168  ;;  %s503_s28 = sand.u32 1, %s3451_s27   ;;  %s507_s19 = scalar_lea.vmem [#allocation7], %s3725_s10 }
  0xe7   : > { %s504_s17 = scalar_lea.sflag [#allocation8], %s503_s28 }
  0xe8   : > { %3291 = dma.done.wait (%p4114_p3), %s504_s17, 256  }
  0xe9   : > { %3293 = vsyncadd (%p4114_p3), %s504_s17, 4294967040  ;;  %s516_s26 = scalar_lea.vmem [#allocation9], %s3725_s10  ;;  %p4115_p6 = scmp.eq.s32.totalorder %s3451_s27, 0 }
  0xeb   : > { %3295 = dma.done.wait (%p4115_p6), [#allocation11], 4096   ;;  %p4116_p0 = pmov %p4115_p6 }
  0xed   : > { %3297 = vsyncadd (%p4116_p0), [#allocation11], 4294963200  ;;  %p4117_p4 = pmov %p4116_p0 }
  0xee   : > { %p4118_p10 = pmov %p4116_p0 }
  0xef   : > { %3299 = dma.done.wait (%p4117_p4), [#allocation14], 4096  }
  0xf0   : > { %3301 = vsyncadd (%p4118_p10), [#allocation14], 4294963200  ;;  %v3343_v0 = vmov 0.0|0.0   ;;  %vm3344_vm0 = vmmov 0   ;;  %v3345_v1 = vmov 0.0   ;;  %v594_v2 = vld [vmem:[#allocation12] sm:$0xff] }
  0xf1   : > { %2762 = vmatprep.subr.bf16.mxu0 %v3343_v0  ;;  %2614 = vmatprep.mubr.msk.f32.mxu0 %vm3344_vm0, %v3345_v1  ;;  %v595_v3 = vld [vmem:[#allocation12 + $0x8] sm:$0xff]  ;;  %v596_v4 = vld [vmem:[#allocation12 + $0x10] sm:$0xff]  ;;  %v597_v6 = vld [vmem:[#allocation12 + $0x18] sm:$0xff]  ;;  %s3346_s18 = smov 96   ;;  %s3347_s12 = smov 32   ;;  %vm1317_vm1 = vcmask 261120  }
  0xf2   : > { %2786 = vmatprep.subr.bf16.mxu1 %v3343_v0  ;;  %2649 = vmatprep.mubr.msk.f32.mxu1 %vm3344_vm0, %v3345_v1  ;;  %v2763_v5 = vpack.c.bf16 %v595_v3, %v594_v2  ;;  %v2766_v7 = vpack.c.bf16 %v597_v6, %v596_v4  ;;  %v598_v8 = vld [vmem:[#allocation12 + $0x20] sm:$0xff]  ;;  %v599_v9 = vld [vmem:[#allocation12 + $0x28] sm:$0xff]  ;;  %v600_v11 = vld [vmem:[#allocation12 + $0x30] sm:$0xff]  ;;  %s3348_s3 = smov 64   ;;  %vm1622_vm2 = vcmask 64512   ;;  %s4119_s14 = sld [smem:[#allocation36_spill]] }
  0xf3   : > { %v2769_v10 = vpack.c.bf16 %v599_v9, %v598_v8  ;;  %v601_v12 = vld [vmem:[#allocation12 + $0x38] sm:$0xff]  ;;  %v602_v14 = vld [vmem:[#allocation12 + $0x40] sm:$0xff]  ;;  %v603_v15 = vld [vmem:[#allocation12 + $0x48] sm:$0xff]  ;;  %s2465_s29 = sshll.u32 %s3722_s25, 5  ;;  %s4120_s5 = sld [smem:[#allocation26_spill]]  ;;  %vm2112_vm3 = vcmask 523264  }
  0xf4   : > { %2764 = vmatpush3.bf16.msra.mxu0 %v2763_v5  ;;  %v2772_v13 = vpack.c.bf16 %v601_v12, %v600_v11  ;;  %v2775_v16 = vpack.c.bf16 %v603_v15, %v602_v14  ;;  %v604_v17 = vld [vmem:[#allocation12 + $0x50] sm:$0xff]  ;;  %v605_v18 = vld [vmem:[#allocation12 + $0x58] sm:$0xff]  ;;  %v606_v20 = vld [vmem:[#allocation12 + $0x60] sm:$0xff]  ;;  %s3883_s15 = scalar_lea.vmem [#allocation17], %s2465_s29  ;;  %s4121_s11 = sld [smem:[#allocation30_spill]]  ;;  %vm2114_vm4 = vcmask 785408  }
  0xf5   : > { %2765 = vmatprep.subr.bf16.mxu0 %v3343_v0  ;;  %v2778_v19 = vpack.c.bf16 %v605_v18, %v604_v17  ;;  %v607_v21 = vld [vmem:[#allocation12 + $0x68] sm:$0xff]  ;;  %v608_v23 = vld [vmem:[#allocation12 + $0x70] sm:$0xff]  ;;  %v609_v24 = vld [vmem:[#allocation12 + $0x78] sm:$0xff]  ;;  %s2244_s24 = sshll.u32 %s3883_s15, 4  ;;  %s4122_s17 = sld [smem:[#allocation39_spill]]  ;;  %s3954_s24 = int_to_ptr.vmem [resolvable:$true] %s2244_s24 }
  0xf6   : > { %v2781_v22 = vpack.c.bf16 %v607_v21, %v606_v20  ;;  %v2784_v25 = vpack.c.bf16 %v609_v24, %v608_v23  ;;  %v783_v26 = vld [vmem:[#allocation10] sm:$0xff]  ;;  %v784_v27 = vld [vmem:[#allocation10 + $0x8] sm:$0xff]  ;;  %v785_v30 = vld [vmem:[#allocation10 + $0x10] sm:$0xff]  ;;  %v3349_v24 = vmov 1983009808   ;;  %s3206_s27 = scalar_lea.vmem %s3954_s24, 512 }
  0xf7   : > { %v592_v28 = vld [vmem:[%s507_s19] sm:$0xff]  ;;  %v2811_v29 = vpack.c.bf16 %v784_v27, %v783_v26  ;;  %v786_v31 = vld [vmem:[#allocation10 + $0x18] sm:$0xff]  ;;  %v789_v36 = vld [vmem:[#allocation10 + $0x30] sm:$0xff]  ;;  %v892_v26 = vlaneseq  ;;  %v3350_v27 = vmov 1934713408   ;;  %p3207_p13 = scmp.ne.s32.totalorder %s3954_s24, %s3206_s27  ;;  %s3351_s20 = smov [#allocation17]  }
  0xf8   : > { %2767 = vmatpush3.bf16.msra.mxu0 %v2766_v7  ;;  %v2814_v32 = vpack.c.bf16 %v786_v31, %v785_v30  ;;  %v787_v33 = vld [vmem:[#allocation10 + $0x20] sm:$0xff]  ;;  %v788_v34 = vld [vmem:[#allocation10 + $0x28] sm:$0xff]  ;;  %v790_v37 = vld [vmem:[#allocation10 + $0x38] sm:$0xff] }
  0xf9   : > { %2768 = vmatprep.subr.bf16.mxu0 %v3343_v0  ;;  %v2817_v35 = vpack.c.bf16 %v788_v34, %v787_v33  ;;  %v2820_v38 = vpack.c.bf16 %v790_v37, %v789_v36  ;;  %v791_v39 = vld [vmem:[#allocation10 + $0x40] sm:$0xff]  ;;  %v792_v40 = vld [vmem:[#allocation10 + $0x48] sm:$0xff]  ;;  %v793_v42 = vld [vmem:[#allocation10 + $0x50] sm:$0xff]  ;;  %v893_v30 = vshrl.u32 %v892_v26, 7  ;;  %s2497_s1 = sshll.u32 %s4120_s5, 9 }
  0xfa   : > { %v2823_v41 = vpack.c.bf16 %v792_v40, %v791_v39  ;;  %v794_v43 = vld [vmem:[#allocation10 + $0x58] sm:$0xff]  ;;  %v795_v45 = vld [vmem:[#allocation10 + $0x60] sm:$0xff]  ;;  %v796_v46 = vld [vmem:[#allocation10 + $0x68] sm:$0xff]  ;;  %p4123_p2 = scmp.ne.s32.totalorder %s4121_s11, 0 }
  0xfb   : > { %v2826_v44 = vpack.c.bf16 %v794_v43, %v793_v42  ;;  %v2829_v47 = vpack.c.bf16 %v796_v46, %v795_v45  ;;  %v797_v48 = vld [vmem:[#allocation10 + $0x70] sm:$0xff]  ;;  %v798_v49 = vld [vmem:[#allocation10 + $0x78] sm:$0xff]  ;;  %v688_v52 = vld [vmem:[#allocation13] sm:$0xff]  ;;  %s3952_s19 = scalar_lea.hbm %s4122_s17, %s2497_s1 }
  0xfc   : > { %2770 = vmatpush3.bf16.msra.mxu0 %v2769_v10  ;;  %v2832_v50 = vpack.c.bf16 %v798_v49, %v797_v48  ;;  %v782_v51 = vld [vmem:[%s498_s13] sm:$0xff]  ;;  %v689_v53 = vld [vmem:[#allocation13 + $0x8] sm:$0xff]  ;;  %v692_v58 = vld [vmem:[#allocation13 + $0x20] sm:$0xff]  ;;  %p3208_p1 = pnand %p3207_p13, %p4123_p2 }
  0xfd   : > { %2771 = vmatprep.subr.bf16.mxu0 %v3343_v0  ;;  %v690_v54 = vld [vmem:[#allocation13 + $0x10] sm:$0xff]  ;;  %v2787_v55 = vpack.c.bf16 %v689_v53, %v688_v52  ;;  %v691_v56 = vld [vmem:[#allocation13 + $0x18] sm:$0xff]  ;;  %v693_v59 = vld [vmem:[#allocation13 + $0x28] sm:$0xff] }
  0xfe   : > { %v2790_v57 = vpack.c.bf16 %v691_v56, %v690_v54  ;;  %v2793_v60 = vpack.c.bf16 %v693_v59, %v692_v58  ;;  %v694_v61 = vld [vmem:[#allocation13 + $0x30] sm:$0xff]  ;;  %v695_v62 = vld [vmem:[#allocation13 + $0x38] sm:$0xff]  ;;  %v696_v2 = vld [vmem:[#allocation13 + $0x40] sm:$0xff]  ;;  %p3209_p12 = pneg %p3208_p1 }
  0xff   : > { %2788 = vmatpush3.bf16.msra.mxu1 %v2787_v55  ;;  %v2796_v63 = vpack.c.bf16 %v695_v62, %v694_v61  ;;  %v697_v3 = vld [vmem:[#allocation13 + $0x48] sm:$0xff]  ;;  %v698_v5 = vld [vmem:[#allocation13 + $0x50] sm:$0xff]  ;;  %v699_v6 = vld [vmem:[#allocation13 + $0x58] sm:$0xff] }
 0x100   : > { %2773 = vmatpush3.bf16.msra.mxu0 %v2772_v13  ;;  %2789 = vmatprep.subr.bf16.mxu1 %v3343_v0  ;;  %v2799_v4 = vpack.c.bf16 %v697_v3, %v696_v2  ;;  %v2802_v7 = vpack.c.bf16 %v699_v6, %v698_v5  ;;  %v700_v8 = vld [vmem:[#allocation13 + $0x60] sm:$0xff]  ;;  %v701_v9 = vld [vmem:[#allocation13 + $0x68] sm:$0xff]  ;;  %v2466_v11 = vld [vmem:[%s4045_s8] ss:$0 sm:$0xff] }
 0x101   : > { %2774 = vmatprep.subr.bf16.mxu0 %v3343_v0  ;;  %v2805_v10 = vpack.c.bf16 %v701_v9, %v700_v8  ;;  %v702_v13 = vld [vmem:[#allocation13 + $0x70] sm:$0xff]  ;;  %v703_v14 = vld [vmem:[#allocation13 + $0x78] sm:$0xff] }
 0x102   : > { %v2808_v17 = vpack.c.bf16 %v703_v14, %v702_v13  ;;  %v593_v18 = vld [vmem:[%s516_s26] sm:$0xff]  ;;  %s2216_s26 = scalar_lea.sflag [#allocation18], %s3722_s25 }
 0x103   : > { %2791 = vmatpush3.bf16.msra.mxu1 %v2790_v57 }
 0x104   : > { %2776 = vmatpush3.bf16.msra.mxu0 %v2775_v16  ;;  %2792 = vmatprep.subr.bf16.mxu1 %v3343_v0 }
 0x105   : > { %2777 = vmatprep.subr.bf16.mxu0 %v3343_v0 }
 0x107   : > { %2794 = vmatpush3.bf16.msra.mxu1 %v2793_v60 }
 0x108   : > { %2779 = vmatpush3.bf16.msra.mxu0 %v2778_v19  ;;  %2795 = vmatprep.subr.bf16.mxu1 %v3343_v0  ;;  %v2468_v19 = vld [vmem:[%s4044_s7] ss:$0 sm:$0xff] }
 0x109   : > { %2780 = vmatprep.subr.bf16.mxu0 %v3343_v0 }
 0x10b   : > { %2797 = vmatpush3.bf16.msra.mxu1 %v2796_v63 }
 0x10c   : > { %2782 = vmatpush3.bf16.msra.mxu0 %v2781_v22  ;;  %2798 = vmatprep.subr.bf16.mxu1 %v3343_v0 }
 0x10d   : > { %2783 = vmatprep.subr.bf16.mxu0 %v3343_v0 }
 0x10f   : > { %2800 = vmatpush3.bf16.msra.mxu1 %v2799_v4 }
 0x110   : > { %2785 = vmatpush3.bf16.msra.mxu0 %v2784_v25  ;;  %2801 = vmatprep.subr.bf16.mxu1 %v3343_v0  ;;  %v890_v25 = vunpack.c.l.s4 %v3349_v24 }
 0x111   : > { %2810 = vmatprep.subr.bf16.mxu0 %v3343_v0 }
 0x113   : > { %2615 = vmatmul.mubr.f32.vlgmr.msra.gmra.mrb[0].mxu0 %v592_v28  ;;  %2803 = vmatpush3.bf16.msra.mxu1 %v2802_v7  ;;  %v922_v28 = vunpack.c.l.s4 %v3350_v27 }
 0x114   : > { %2812 = vmatpush3.bf16.msra.mxu0 %v2811_v29  ;;  %2684 = vmatprep.mubr.msk.f32.mxu0 %vm3344_vm0, %v3345_v1  ;;  %v891_v29 = vunpack.c.0.s8 %v890_v25 }
 0x115   : > { %2813 = vmatprep.subr.bf16.mxu0 %v3343_v0  ;;  %2804 = vmatprep.subr.bf16.mxu1 %v3343_v0  ;;  %v923_v33 = vunpack.c.0.s8 %v922_v28 }
 0x116   : > { %v3802_v34 = vsub.s32 %v891_v29, %v893_v30 }
 0x117   : > { %2806 = vmatpush3.bf16.msra.mxu1 %v2805_v10  ;;  %v3804_v40 = vsub.s32 %v923_v33, %v893_v30 }
 0x118   : > { %2815 = vmatpush3.bf16.msra.mxu0 %v2814_v32  ;;  %2807 = vmatprep.subr.bf16.mxu1 %v3343_v0 }
 0x119   : > { %2816 = vmatprep.subr.bf16.mxu0 %v3343_v0 }
 0x11b   : > { %2809 = vmatpush3.bf16.msra.mxu1 %v2808_v17 }
 0x11c   : > { %2818 = vmatpush3.bf16.msra.mxu0 %v2817_v35  ;;  %2687 = vmatprep.subr.mxu1 %v3345_v1 }
 0x11d   : > { %2819 = vmatprep.subr.bf16.mxu0 %v3343_v0 }
 0x11e   : > { %2650 = vmatmul.mubr.f32.vlgmr.msra.gmra.mrb[0].mxu1 %v593_v18 }
 0x11f   : > { %2689 = vmatprep.mubr.msk.f32.mxu1 %vm3344_vm0, %v3345_v1 }
 0x120   : > { %2821 = vmatpush3.bf16.msra.mxu0 %v2820_v38 }
 0x121   : > { %2822 = vmatprep.subr.bf16.mxu0 %v3343_v0 }
 0x124   : > { %2824 = vmatpush3.bf16.msra.mxu0 %v2823_v41 }
 0x125   : > { %2825 = vmatprep.subr.bf16.mxu0 %v3343_v0 }
 0x128   : > { %2827 = vmatpush3.bf16.msra.mxu0 %v2826_v44 }
 0x129   : > { %2828 = vmatprep.subr.bf16.mxu0 %v3343_v0 }
 0x12c   : > { %2830 = vmatpush3.bf16.msra.mxu0 %v2829_v47 }
 0x12d   : > { %2831 = vmatprep.subr.bf16.mxu0 %v3343_v0 }
 0x130   : > { %2833 = vmatpush3.bf16.msra.mxu0 %v2832_v50 }
 0x131   : > { %2834 = vmatprep.subr.bf16.mxu0 %v3343_v0 }
 0x133   : > { %2685 = vmatmul.mubr.f32.vlgmr.msra.gmra.mrb[2].mxu0 %v782_v51 }
 0x134   : > { %2759 = vmatprep.mubr.msk.f32.mxu0 %vm3344_vm0, %v3345_v1 }
 0x1e6   : > { %v683_v12 = vpop.f32.mrb[0].mxu0 }
 0x1e7   : > { %v684_v15 = vadd.f32 %v2466_v11, %v683_v12  ;;  %v2616_v16 = vpop.f32.mrb[1].mxu0 }
 0x1e9   : > { %1025 = vrot.lane.b32.xlu0 %v684_v15, %s3346_s18  ;;  %1031 = vrot.lane.b32.xlu1 %v684_v15, %s3347_s12 }
 0x1ed   : > { %1028 = vrot.lane.b32.xlu0 %v684_v15, %s3348_s3 }
 0x206   : > { %v872_v20 = vpop.f32.mrb[2].mxu0 }
 0x207   : > { %v873_v21 = vadd.f32 %v2468_v19, %v872_v20  ;;  %v2686_v22 = vpop.f32.mrb[3].mxu0 }
 0x209   : > { %v876_v23 = vmul.f32 0.17677669, %v873_v21 }
 0x20b   : > { %881 = vrot.lane.b32.xlu0 %v876_v23, %s3348_s3  ;;  %878 = vrot.lane.b32.xlu1 %v876_v23, %s3346_s18 }
 0x20f   : > { %884 = vrot.lane.b32.xlu1 %v876_v23, %s3347_s12 }
 0x25b   : > { %v1026_v31 = vpop.permute.xlu0 %1025  ;;  %v1032_v32 = vpop.permute.xlu1 %1031 }
 0x25c   : > { %v1050_v35 = vcombine.low %v1026_v31, %v1032_v32  ;;  %v1051_v36 = vcombine.high %v1026_v31, %v1032_v32 }
 0x25e   : > { %v1058_v41 = vrot.slane %v1050_v35, %v3802_v34  ;;  %v1065_v42 = vrot.slane %v1051_v36, %v3802_v34 }
 0x25f   : > { %v1029_v37 = vpop.permute.xlu0 %1028 }
 0x260   : > { %v1034_v38 = vcombine.low %v684_v15, %v1029_v37  ;;  %v1035_v39 = vcombine.high %v684_v15, %v1029_v37 }
 0x262   : > { %v1042_v43 = vrot.slane %v1034_v38, %v3802_v34  ;;  %v1049_v44 = vrot.slane %v1035_v39, %v3802_v34 }
 0x264   : > { %v1066_v45 = vcombine.low %v1042_v43, %v1058_v41  ;;  %v1067_v46 = vcombine.high %v1042_v43, %v1058_v41  ;;  %v1082_v47 = vcombine.low %v1049_v44, %v1065_v42  ;;  %v1083_v48 = vcombine.high %v1049_v44, %v1065_v42 }
 0x266   : > { %v1074_v49 = vrot.slane %v1066_v45, %v3804_v40  ;;  %v1081_v50 = vrot.slane %v1067_v46, %v3804_v40  ;;  %v1090_v51 = vrot.slane %v1082_v47, %v3804_v40  ;;  %v1097_v52 = vrot.slane %v1083_v48, %v3804_v40 }
 0x268   : > { %v1102_v53 = vcombine.low %v1074_v49, %v1081_v50  ;;  %v2471_v54 = vcombine.high %v1074_v49, %v1081_v50  ;;  %v1118_v55 = vcombine.low %v1090_v51, %v1097_v52  ;;  %v2472_v56 = vcombine.high %v1090_v51, %v1097_v52  ;;  %v777_v52 = vpop.f32.mrb[0].mxu1 }
 0x26a   : > { %v1109_v57 = vrot.slane %v1102_v53, %v3802_v34  ;;  %v1117_v58 = vrot.slane %v2471_v54, %v3802_v34  ;;  %v1125_v59 = vrot.slane %v1118_v55, %v3802_v34  ;;  %v1133_v60 = vrot.slane %v2472_v56, %v3802_v34  ;;  %v2651_v53 = vpop.f32.mrb[1].mxu1 }
 0x26c   : > { %v1134_v61 = vcombine.low %v1109_v57, %v1117_v58  ;;  %v1150_v62 = vcombine.low %v1125_v59, %v1133_v60  ;;  %v1135_v33 = vcombine.high %v1109_v57, %v1117_v58  ;;  %v1151_v35 = vcombine.high %v1125_v59, %v1133_v60 }
 0x26e   : > { %v1142_v63 = vrot.slane %v1134_v61, %v3804_v40  ;;  %v1158_v2 = vrot.slane %v1150_v62, %v3804_v40  ;;  %v1149_v43 = vrot.slane %v1135_v33, %v3804_v40  ;;  %v1165_v44 = vrot.slane %v1151_v35, %v3804_v40 }
 0x270   : > { %v1166_v3 = vcombine.low %v1142_v63, %v1158_v2  ;;  %v1167_v42 = vcombine.high %v1142_v63, %v1158_v2  ;;  %v1168_v48 = vcombine.low %v1149_v43, %v1165_v44  ;;  %v1169_v50 = vcombine.high %v1149_v43, %v1165_v44 }
 0x272   : > { %2688 = vmatpush3.xpose.msk.msra.mxu1 %vm1317_vm1, %v1166_v3 }
 0x273   : > { %2692 = vmatprep.subr.mxu1 %v3345_v1 }
 0x27d   : > { %v882_v4 = vpop.permute.xlu0 %881  ;;  %v879_v5 = vpop.permute.xlu1 %878 }
 0x27e   : > { %v887_v6 = vcombine.low %v876_v23, %v882_v4  ;;  %v888_v7 = vcombine.high %v876_v23, %v882_v4  ;;  %v2467_v4 = vld [vmem:[%s4119_s14] ss:$0 sm:$0xff] }
 0x280   : > { %v895_v11 = vrot.slane %v887_v6, %v3802_v34  ;;  %v902_v12 = vrot.slane %v888_v7, %v3802_v34 }
 0x281   : > { %v885_v8 = vpop.permute.xlu1 %884 }
 0x282   : > { %v903_v9 = vcombine.low %v879_v5, %v885_v8  ;;  %v904_v10 = vcombine.high %v879_v5, %v885_v8  ;;  %v778_v5 = vadd.f32 %v2467_v4, %v777_v52 }
 0x284   : > { %v911_v13 = vrot.slane %v903_v9, %v3802_v34  ;;  %v918_v14 = vrot.slane %v904_v10, %v3802_v34 }
 0x286   : > { %v919_v15 = vcombine.low %v895_v11, %v911_v13  ;;  %v920_v16 = vcombine.high %v895_v11, %v911_v13  ;;  %v935_v17 = vcombine.low %v902_v12, %v918_v14  ;;  %v936_v18 = vcombine.high %v902_v12, %v918_v14 }
 0x288   : > { %v927_v19 = vrot.slane %v919_v15, %v3804_v40  ;;  %v934_v20 = vrot.slane %v920_v16, %v3804_v40  ;;  %v943_v21 = vrot.slane %v935_v17, %v3804_v40  ;;  %v950_v22 = vrot.slane %v936_v18, %v3804_v40 }
 0x28a   : > { %v955_v23 = vcombine.low %v927_v19, %v934_v20  ;;  %v2469_v24 = vcombine.high %v927_v19, %v934_v20  ;;  %v971_v25 = vcombine.low %v943_v21, %v950_v22  ;;  %v2470_v26 = vcombine.high %v943_v21, %v950_v22 }
 0x28c   : > { %v962_v27 = vrot.slane %v955_v23, %v3802_v34  ;;  %v970_v28 = vrot.slane %v2469_v24, %v3802_v34  ;;  %v978_v29 = vrot.slane %v971_v25, %v3802_v34  ;;  %v986_v30 = vrot.slane %v2470_v26, %v3802_v34 }
 0x28e   : > { %v987_v31 = vcombine.low %v962_v27, %v970_v28  ;;  %v1003_v32 = vcombine.low %v978_v29, %v986_v30  ;;  %v988_v38 = vcombine.high %v962_v27, %v970_v28  ;;  %v1004_v39 = vcombine.high %v978_v29, %v986_v30 }
 0x290   : > { %v995_v36 = vrot.slane %v987_v31, %v3804_v40  ;;  %v1011_v37 = vrot.slane %v1003_v32, %v3804_v40  ;;  %v1002_v46 = vrot.slane %v988_v38, %v3804_v40  ;;  %v1018_v47 = vrot.slane %v1004_v39, %v3804_v40 }
 0x292   : > { %v1019_v41 = vcombine.low %v995_v36, %v1011_v37  ;;  %v1020_v45 = vcombine.high %v995_v36, %v1011_v37  ;;  %v1021_v49 = vcombine.low %v1002_v46, %v1018_v47  ;;  %v1022_v51 = vcombine.high %v1002_v46, %v1018_v47 }
 0x294   : > { %2690 = vmatmul.mubr.msk.f32.vlgmr.msra.gmra.mrb[2].mxu1 %vm1317_vm1, %v1019_v41 }
 0x295   : > { %2693 = vmatpush3.xpose.msk.msra.mxu1 %vm1317_vm1, %v1167_v42  ;;  %2694 = vmatprep.mubr.msk.f32.mxu1 %vm3344_vm0, %v3345_v1 }
 0x296   : > { %2697 = vmatprep.subr.mxu1 %v3345_v1 }
 0x298   : > { %2695 = vmatmul.mubr.msk.f32.vlgmr.msra.gmra.mrb[4].mxu1 %vm1317_vm1, %v1020_v45 }
 0x299   : > { %2698 = vmatpush3.xpose.msk.msra.mxu1 %vm1317_vm1, %v1168_v48  ;;  %2699 = vmatprep.mubr.msk.f32.mxu1 %vm3344_vm0, %v3345_v1 }
 0x29a   : > { %2702 = vmatprep.subr.mxu1 %v3345_v1 }
 0x29c   : > { %2700 = vmatmul.mubr.msk.f32.vlgmr.msra.gmra.mrb[6].mxu1 %vm1317_vm1, %v1021_v49 }
 0x29d   : > { %2703 = vmatpush3.xpose.msk.msra.mxu1 %vm1317_vm1, %v1169_v50  ;;  %2704 = vmatprep.mubr.msk.f32.mxu1 %vm3344_vm0, %v3345_v1 }
 0x29e   : > { %2707 = vmatprep.subr.mxu1 %v3345_v1 }
 0x2a0   : > { %2705 = vmatmul.mubr.msk.f32.vlgmr.msra.gmra.mrb[8].mxu1 %vm1317_vm1, %v1022_v51 }
 0x2a1   : > { %2709 = vmatprep.mubr.msk.f32.mxu1 %vm3344_vm0, %v3345_v1 }
 0x367   : > { %v1390_v54 = vpop.f32.mrb[2].mxu1 }
 0x368   : > { %v2691_v55 = vpop.f32.mrb[3].mxu1  ;;  %v1623_v56 = vsel %vm1622_vm2, %v1390_v54, -inf }
 0x369   : > { %1624 = vmax.xlane.f32.xlu0 %v1623_v56 }
 0x36b   : > { %v1466_v57 = vpop.f32.mrb[4].mxu1 }
 0x36c   : > { %v2696_v58 = vpop.f32.mrb[5].mxu1  ;;  %v1626_v59 = vsel %vm1622_vm2, %v1466_v57, -inf }
 0x36d   : > { %1627 = vmax.xlane.f32.xlu1 %v1626_v59 }
 0x36f   : > { %v1542_v60 = vpop.f32.mrb[6].mxu1 }
 0x370   : > { %v2701_v61 = vpop.f32.mrb[7].mxu1  ;;  %v1629_v62 = vsel %vm1622_vm2, %v1542_v60, -inf }
 0x371   : > { %1630 = vmax.xlane.f32.xlu0 %v1629_v62 }
 0x373   : > { %v1618_v63 = vpop.f32.mrb[8].mxu1 }
 0x374   : > { %v2706_v2 = vpop.f32.mrb[9].mxu1  ;;  %v1632_v3 = vsel %vm1622_vm2, %v1618_v63, -inf }
 0x375   : > { %1633 = vmax.xlane.f32.xlu0 %v1632_v3 }
 0x37e   : > { %1172 = vrot.lane.b32.xlu1 %v778_v5, %s3346_s18 }
 0x3f6   : > { %v1625_v6 = vpop.xlane.xlu0 %1624 }
 0x3f7   : > { %v1635_v7 = vsub.f32 %v1390_v54, %v1625_v6 }
 0x3f9   : > { %v1639_v8 = vmul.f32 1.442695, %v1635_v7 }
 0x3fa   : > { %v1628_v9 = vpop.xlane.xlu1 %1627 }
 0x3fb   : > { %2988 = vpow2.f32 %v1639_v8  ;;  %v1636_v10 = vsub.f32 %v1466_v57, %v1628_v9 }
 0x3fd   : > { %v1641_v11 = vmul.f32 1.442695, %v1636_v10 }
 0x3fe   : > { %v1631_v16 = vpop.xlane.xlu0 %1630  ;;  %v1173_v26 = vpop.permute.xlu1 %1172 }
 0x3ff   : > { %2990 = vpow2.f32 %v1641_v11  ;;  %v1637_v17 = vsub.f32 %v1542_v60, %v1631_v16 }
 0x401   : > { %v1643_v19 = vmul.f32 1.442695, %v1637_v17  ;;  %v2116_v17 = vld [vmem:[#allocation15] sm:$0xff] }
 0x402   : > { %v1634_v18 = vpop.xlane.xlu0 %1633 }
 0x403   : > { %v1638_v20 = vsub.f32 %v1618_v63, %v1634_v18  ;;  %2992 = vpow2.f32 %v1643_v19  ;;  %v2117_v18 = vld [vmem:[#allocation15 + $0x8] sm:$0xff]  ;;  %v2118_v19 = vld [vmem:[#allocation15 + $0x10] sm:$0xff] }
 0x405   : > { %v2989_v12 = vpop.eup %2988  ;;  %v1645_v21 = vmul.f32 1.442695, %v1638_v20  ;;  %v2835_v20 = vpack.c.bf16 %v2117_v18, %v2116_v17 }
 0x406   : > { %v1647_v13 = vsel %vm1622_vm2, %v2989_v12, 0.0 }
 0x407   : > { %1648 = vadd.xlane.f32.xlu1 %v1647_v13  ;;  %2994 = vpow2.f32 %v1645_v21  ;;  %v2119_v21 = vld [vmem:[#allocation15 + $0x18] sm:$0xff]  ;;  %2836 = vmatpush3.bf16.msra.mxu0 %v2835_v20 }
 0x408   : > { %2837 = vmatprep.subr.bf16.mxu0 %v3343_v0 }
 0x409   : > { %v2991_v14 = vpop.eup %2990 }
 0x40a   : > { %v1650_v15 = vsel %vm1622_vm2, %v2991_v14, 0.0 }
 0x40b   : > { %1651 = vadd.xlane.f32.xlu0 %v1650_v15 }
 0x40d   : > { %v3870_v22 = vpop.eup %2992 }
 0x40e   : > { %v1653_v23 = vsel %vm1622_vm2, %v3870_v22, 0.0 }
 0x411   : > { %v3874_v24 = vpop.eup %2994 }
 0x412   : > { %v1656_v25 = vsel %vm1622_vm2, %v3874_v24, 0.0 }
 0x418   : > { %1178 = vrot.lane.b32.xlu1 %v778_v5, %s3347_s12 }
 0x421   : > { %1175 = vrot.lane.b32.xlu0 %v778_v5, %s3348_s3 }
 0x43c   : > { %1654 = vadd.xlane.f32.xlu1 %v1653_v23  ;;  %v2120_v23 = vld [vmem:[#allocation15 + $0x20] sm:$0xff] }
 0x440   : > { %1657 = vadd.xlane.f32.xlu0 %v1656_v25  ;;  %v2121_v25 = vld [vmem:[#allocation15 + $0x28] sm:$0xff] }
 0x494   : > { %v1649_v27 = vpop.xlane.xlu1 %1648 }
 0x495   : > { %2996 = vrcp.f32 %v1649_v27 }
 0x498   : > { %v1179_v28 = vpop.permute.xlu1 %1178  ;;  %v1652_v29 = vpop.xlane.xlu0 %1651 }
 0x499   : > { %2998 = vrcp.f32 %v1652_v29  ;;  %v1197_v30 = vcombine.low %v1173_v26, %v1179_v28  ;;  %v1198_v31 = vcombine.high %v1173_v26, %v1179_v28  ;;  %v2841_v26 = vpack.c.bf16 %v2121_v25, %v2120_v23  ;;  %v2124_v28 = vld [vmem:[#allocation15 + $0x40] sm:$0xff]  ;;  %v2125_v29 = vld [vmem:[#allocation15 + $0x48] sm:$0xff] }
 0x49b   : > { %v1205_v37 = vrot.slane %v1197_v30, %v3802_v34  ;;  %v1212_v38 = vrot.slane %v1198_v31, %v3802_v34  ;;  %v2847_v30 = vpack.c.bf16 %v2125_v29, %v2124_v28  ;;  %v2126_v31 = vld [vmem:[#allocation15 + $0x50] sm:$0xff] }
 0x49c   : > { %v1176_v32 = vpop.permute.xlu0 %1175 }
 0x49d   : > { %v1181_v33 = vcombine.low %v778_v5, %v1176_v32  ;;  %v1182_v35 = vcombine.high %v778_v5, %v1176_v32  ;;  %v2127_v32 = vld [vmem:[#allocation15 + $0x58] sm:$0xff] }
 0x49f   : > { %v2997_v36 = vpop.eup %2996  ;;  %v1189_v39 = vrot.slane %v1181_v33, %v3802_v34  ;;  %v1196_v41 = vrot.slane %v1182_v35, %v3802_v34  ;;  %v2850_v33 = vpack.c.bf16 %v2127_v32, %v2126_v31  ;;  %v2128_v35 = vld [vmem:[#allocation15 + $0x60] sm:$0xff] }
 0x4a0   : > { %v1660_v42 = vmul.f32 %v2997_v36, %v2989_v12  ;;  %v2129_v36 = vld [vmem:[#allocation15 + $0x68] sm:$0xff] }
 0x4a1   : > { %v1213_v43 = vcombine.low %v1189_v39, %v1205_v37  ;;  %v1214_v44 = vcombine.high %v1189_v39, %v1205_v37  ;;  %v1229_v45 = vcombine.low %v1196_v41, %v1212_v38  ;;  %v1230_v46 = vcombine.high %v1196_v41, %v1212_v38 }
 0x4a2   : > { %1667 = vst.msk [vmem:[%s3883_s15] sm:$0xff] %vm1622_vm2, %v1660_v42  ;;  %v2853_v37 = vpack.c.bf16 %v2129_v36, %v2128_v35 }
 0x4a3   : > { %v2999_v47 = vpop.eup %2998  ;;  %v1221_v48 = vrot.slane %v1213_v43, %v3804_v40  ;;  %v1228_v49 = vrot.slane %v1214_v44, %v3804_v40  ;;  %v1237_v50 = vrot.slane %v1229_v45, %v3804_v40  ;;  %v1244_v51 = vrot.slane %v1230_v46, %v3804_v40 }
 0x4a4   : > { %v1662_v52 = vmul.f32 %v2999_v47, %v2991_v14 }
 0x4a5   : > { %v1249_v53 = vcombine.low %v1221_v48, %v1228_v49  ;;  %v2473_v54 = vcombine.high %v1221_v48, %v1228_v49  ;;  %v1265_v55 = vcombine.low %v1237_v50, %v1244_v51  ;;  %v2474_v56 = vcombine.high %v1237_v50, %v1244_v51 }
 0x4a6   : > { %1668 = vst.msk [vmem:[%s3883_s15 + $0x8] sm:$0xff] %vm1622_vm2, %v1662_v52 }
 0x4a7   : > { %v1256_v57 = vrot.slane %v1249_v53, %v3802_v34  ;;  %v1264_v58 = vrot.slane %v2473_v54, %v3802_v34  ;;  %v1272_v59 = vrot.slane %v1265_v55, %v3802_v34  ;;  %v1280_v60 = vrot.slane %v2474_v56, %v3802_v34 }
 0x4a9   : > { %v1281_v61 = vcombine.low %v1256_v57, %v1264_v58  ;;  %v1297_v62 = vcombine.low %v1272_v59, %v1280_v60  ;;  %v1282_v3 = vcombine.high %v1256_v57, %v1264_v58  ;;  %v1298_v4 = vcombine.high %v1272_v59, %v1280_v60  ;;  %v2130_v58 = vld [vmem:[#allocation15 + $0x70] sm:$0xff]  ;;  %v2131_v59 = vld [vmem:[#allocation15 + $0x78] sm:$0xff] }
 0x4ab   : > { %v1289_v63 = vrot.slane %v1281_v61, %v3804_v40  ;;  %v1305_v2 = vrot.slane %v1297_v62, %v3804_v40  ;;  %v1296_v7 = vrot.slane %v1282_v3, %v3804_v40  ;;  %v1312_v8 = vrot.slane %v1298_v4, %v3804_v40 }
 0x4ad   : > { %v1313_v5 = vcombine.low %v1289_v63, %v1305_v2  ;;  %v1314_v6 = vcombine.high %v1289_v63, %v1305_v2  ;;  %v1315_v9 = vcombine.low %v1296_v7, %v1312_v8  ;;  %v1316_v14 = vcombine.high %v1296_v7, %v1312_v8 }
 0x4ae   : > { %v2856_v2 = vpack.c.bf16 %v2131_v59, %v2130_v58 }
 0x4af   : > { %2708 = vmatpush3.msra.mxu1 %v1313_v5 }
 0x4b0   : > { %2710 = vmatmul.mubr.msk.f32.vlgmr.msra.gmra.mrb[10].mxu1 %vm1622_vm2, %v1660_v42  ;;  %2712 = vmatprep.subr.mxu1 %v3345_v1 }
 0x4b1   : > { %2713 = vmatpush3.msra.mxu1 %v1314_v6  ;;  %2714 = vmatprep.mubr.msk.f32.mxu1 %vm3344_vm0, %v3345_v1 }
 0x4b2   : > { %2717 = vmatprep.subr.mxu1 %v3345_v1 }
 0x4b4   : > { %2715 = vmatmul.mubr.msk.f32.vlgmr.msra.gmra.mrb[12].mxu1 %vm1622_vm2, %v1662_v52 }
 0x4b5   : > { %2718 = vmatpush3.msra.mxu1 %v1315_v9  ;;  %2719 = vmatprep.mubr.msk.f32.mxu1 %vm3344_vm0, %v3345_v1 }
 0x4b6   : > { %2722 = vmatprep.subr.mxu1 %v3345_v1 }
 0x4c9   : > { %v1655_v10 = vpop.xlane.xlu1 %1654 }
 0x4ca   : > { %3000 = vrcp.f32 %v1655_v10 }
 0x4cd   : > { %v1658_v11 = vpop.xlane.xlu0 %1657 }
 0x4ce   : > { %3002 = vrcp.f32 %v1658_v11 }
 0x4d4   : > { %v3001_v12 = vpop.eup %3000 }
 0x4d5   : > { %v1664_v13 = vmul.f32 %v3001_v12, %v3870_v22  ;;  %v2838_v22 = vpack.c.bf16 %v2119_v21, %v2118_v19 }
 0x4d7   : > { %1669 = vst.msk [vmem:[%s3883_s15 + $0x10] sm:$0xff] %vm1622_vm2, %v1664_v13  ;;  %2720 = vmatmul.mubr.msk.f32.vlgmr.msra.gmra.mrb[14].mxu1 %vm1622_vm2, %v1664_v13  ;;  %2839 = vmatpush3.bf16.msra.mxu0 %v2838_v22 }
 0x4d8   : > { %v3003_v15 = vpop.eup %3002  ;;  %2723 = vmatpush3.msra.mxu1 %v1316_v14  ;;  %2724 = vmatprep.mubr.msk.f32.mxu1 %vm3344_vm0, %v3345_v1  ;;  %v2122_v1 = vld [vmem:[#allocation15 + $0x30] sm:$0xff] }
 0x4d9   : > { %v1666_v16 = vmul.f32 %v3003_v15, %v3874_v24  ;;  %2840 = vmatprep.subr.bf16.mxu0 %v3343_v0  ;;  %v2123_v24 = vld [vmem:[#allocation15 + $0x38] sm:$0xff] }
 0x4da   : > { %v2844_v27 = vpack.c.bf16 %v2123_v24, %v2122_v1 }
 0x4db   : > { %1670 = vst.msk [vmem:[%s3883_s15 + $0x18] sm:$0xff] %vm1622_vm2, %v1666_v16  ;;  %2725 = vmatmul.mubr.msk.f32.vlgmr.msra.gmra.mrb[16].mxu1 %vm1622_vm2, %v1666_v16  ;;  %2842 = vmatpush3.bf16.msra.mxu0 %v2841_v26 }
 0x4dc   : > { %2843 = vmatprep.subr.bf16.mxu0 %v3343_v0 }
 0x4df   : > { %2845 = vmatpush3.bf16.msra.mxu0 %v2844_v27 }
 0x4e0   : > { %2846 = vmatprep.subr.bf16.mxu0 %v3343_v0 }
 0x4e3   : > { %2848 = vmatpush3.bf16.msra.mxu0 %v2847_v30 }
 0x4e4   : > { %2849 = vmatprep.subr.bf16.mxu0 %v3343_v0 }
 0x4e7   : > { %2851 = vmatpush3.bf16.msra.mxu0 %v2850_v33 }
 0x4e8   : > { %2852 = vmatprep.subr.bf16.mxu0 %v3343_v0 }
 0x4eb   : > { %2854 = vmatpush3.bf16.msra.mxu0 %v2853_v37 }
 0x4ec   : > { %2855 = vmatprep.subr.bf16.mxu0 %v3343_v0 }
 0x4ef   : > { %2857 = vmatpush3.bf16.msra.mxu0 %v2856_v2 }
 0x583   : > { %v1740_v38 = vpop.f32.mrb[10].mxu1 }
 0x584   : > { %v2711_v39 = vpop.f32.mrb[11].mxu1 }
 0x587   : > { %v1813_v41 = vpop.f32.mrb[12].mxu1 }
 0x588   : > { %v2716_v42 = vpop.f32.mrb[13].mxu1 }
 0x5aa   : > { %v1886_v43 = vpop.f32.mrb[14].mxu1 }
 0x5ab   : > { %v1963_v44 = vcombine.low %v1740_v38, %v1886_v43  ;;  %v1964_v45 = vcombine.high %v1740_v38, %v1886_v43  ;;  %v2721_v46 = vpop.f32.mrb[15].mxu1 }
 0x5ad   : > { %v1971_v51 = vrot.slane %v1963_v44, %v3802_v34  ;;  %v1978_v52 = vrot.slane %v1964_v45, %v3802_v34 }
 0x5ae   : > { %v1959_v47 = vpop.f32.mrb[16].mxu1 }
 0x5af   : > { %v1979_v48 = vcombine.low %v1813_v41, %v1959_v47  ;;  %v1980_v49 = vcombine.high %v1813_v41, %v1959_v47  ;;  %v2726_v50 = vpop.f32.mrb[17].mxu1 }
 0x5b1   : > { %v1987_v53 = vrot.slane %v1979_v48, %v3802_v34  ;;  %v1994_v0 = vrot.slane %v1980_v49, %v3802_v34 }
 0x5b3   : > { %v1995_v54 = vcombine.low %v1971_v51, %v1987_v53  ;;  %v1996_v55 = vcombine.high %v1971_v51, %v1987_v53  ;;  %v2011_v56 = vcombine.low %v1978_v52, %v1994_v0  ;;  %v2012_v57 = vcombine.high %v1978_v52, %v1994_v0 }
 0x5b5   : > { %v2003_v60 = vrot.slane %v1995_v54, %v3804_v40  ;;  %v2010_v61 = vrot.slane %v1996_v55, %v3804_v40  ;;  %v2019_v62 = vrot.slane %v2011_v56, %v3804_v40  ;;  %v2026_v63 = vrot.slane %v2012_v57, %v3804_v40 }
 0x5b7   : > { %v2031_v3 = vcombine.low %v2003_v60, %v2010_v61  ;;  %v2487_v4 = vcombine.high %v2003_v60, %v2010_v61  ;;  %v2047_v5 = vcombine.low %v2019_v62, %v2026_v63  ;;  %v2488_v6 = vcombine.high %v2019_v62, %v2026_v63 }
 0x5b9   : > { %v2038_v7 = vrot.slane %v2031_v3, %v3802_v34  ;;  %v2046_v8 = vrot.slane %v2487_v4, %v3802_v34  ;;  %v2054_v9 = vrot.slane %v2047_v5, %v3802_v34  ;;  %v2062_v10 = vrot.slane %v2488_v6, %v3802_v34 }
 0x5bb   : > { %v2064_v11 = vcombine.high %v2038_v7, %v2046_v8  ;;  %v2080_v12 = vcombine.high %v2054_v9, %v2062_v10  ;;  %v2063_v13 = vcombine.low %v2038_v7, %v2046_v8  ;;  %v2079_v14 = vcombine.low %v2054_v9, %v2062_v10 }
 0x5bd   : > { %v2078_v15 = vrot.slane %v2064_v11, %v3804_v40  ;;  %v2094_v16 = vrot.slane %v2080_v12, %v3804_v40  ;;  %v2071_v17 = vrot.slane %v2063_v13, %v3804_v40  ;;  %v2087_v18 = vrot.slane %v2079_v14, %v3804_v40 }
 0x5bf   : > { %v2097_v19 = vcombine.low %v2078_v15, %v2094_v16  ;;  %v2096_v20 = vcombine.high %v2071_v17, %v2087_v18  ;;  %v2098_v21 = vcombine.high %v2078_v15, %v2094_v16  ;;  %v2095_v22 = vcombine.low %v2071_v17, %v2087_v18 }
 0x5c1   : > { %2104 = vrot.lane.b32.xlu1 %v2097_v19, %s3348_s3  ;;  %2100 = vrot.lane.b32.xlu0 %v2096_v20, %s3347_s12 }
 0x5c5   : > { %2108 = vrot.lane.b32.xlu1 %v2098_v21, %s3346_s18  ;;  %s3210_s18 = sshll.u32 %s3351_s20, 4  ;;  %s3211_s18 = int_to_ptr.vmem [resolvable:$false] %s3210_s18 }
 0x5c6   : > { %s3212_s12 = scalar_lea.vmem %s3211_s18, 1024  ;;  %p3213_p8 = scmp.lt.s32.totalorder %s3954_s24, %s3211_s18 }
 0x5c7   : > { %p3214_p9 = scmp.lt.s32.totalorder %s3212_s12, %s3206_s27 }
 0x5c9   : > { %p3215_p7 = por %p3214_p9, %p3213_p8 }
 0x5cb   : > { %p3216_p11 = pnand %p3215_p7, %p3209_p12 }
 0x633   : > { %v2105_v34 = vpop.permute.xlu1 %2104  ;;  %v2101_v23 = vpop.permute.xlu0 %2100 }
 0x634   : > { %v2111_v25 = vsel %vm1317_vm1, %v2095_v22, %v2101_v23 }
 0x635   : > { %v2113_v26 = vsel %vm2112_vm3, %v2111_v25, %v2105_v34 }
 0x637   : > { %v2109_v40 = vpop.permute.xlu1 %2108 }
 0x638   : > { %v2115_v1 = vsel %vm2114_vm4, %v2113_v26, %v2109_v40 }
 0x639   : > { %2760 = vmatmul.mubr.f32.vlgmr.msra.gmra.mrb[4].mxu0 %v2115_v1 }
 0x63a   : > { %3219 = shalt.err (!%p3216_p11)
}
 0x63b   : > { %s3220_s3 = scalar_lea.hbm %s3952_s19, 512  ;;  %s3224_s21 = scalar_lea.hbm %s4122_s17, 1024 }
 0x63c   : > { %p3221_p5 = scmp.ne.s32.totalorder %s3952_s19, %s3220_s3  ;;  %p3225_p0 = scmp.lt.u32.totalorder %s3952_s19, %s4122_s17 }
 0x63d   : > { %p3226_p4 = scmp.lt.u32.totalorder %s3224_s21, %s3220_s3  ;;  %p3228_p13 = scmp.lt.u32.totalorder %s3220_s3, %s3952_s19 }
 0x63e   : > { %p3222_p3 = pnand %p3221_p5, %p4123_p2 }
 0x63f   : > { %p3227_p10 = por %p3226_p4, %p3225_p0 }
 0x640   : > { %p3223_p6 = pneg %p3222_p3 }
 0x641   : > { %p3229_p1 = por %p3228_p13, %p3227_p10 }
 0x643   : > { %p3230_p12 = pnand %p3229_p1, %p3223_p6 }
 0x645   : > { %3233 = shalt.err (!%p3230_p12)
}
 0x646   : > { %s3352_s29 = smov 128   ;;  %s3353_s15 = smov 8  }
 0x647   : > { %2881 = dma.vmem_to_hbm [thread:$0]  (%p4123_p2), %s3954_s24, 512, %s3952_s19, %s2216_s26, %s3352_s29, %s3352_s29, %s3353_s15  }
 0x648   : > { %s4124_s28 = sld [smem:[#allocation37_spill]]  ;;  %s2492_s27 = sshll.u32 %s4120_s5, 7 }
 0x649   : > { %s580_s20 = scalar_lea.vmem [#allocation16], %s3725_s10  ;;  %s4125_s30 = sld [smem:[#allocation38_spill]] }
 0x64a   : > { %s2230_s18 = sshll.u32 %s580_s20, 4  ;;  %s2211_s24 = scalar_lea.sflag [#allocation6], %s3722_s25  ;;  %s3990_s18 = int_to_ptr.vmem [resolvable:$true] %s2230_s18 }
 0x64b   : > { %s3234_s19 = scalar_lea.vmem %s3990_s18, 128  ;;  %s3354_s10 = smov [#allocation16]  }
 0x64c   : > { %p3235_p8 = scmp.ne.s32.totalorder %s3990_s18, %s3234_s19  ;;  %s3238_s5 = sshll.u32 %s3354_s10, 4  ;;  %s3239_s5 = int_to_ptr.vmem [resolvable:$false] %s3238_s5 }
 0x64d   : > { %s3240_s26 = scalar_lea.vmem %s3239_s5, 256  ;;  %p3241_p11 = scmp.lt.s32.totalorder %s3990_s18, %s3239_s5 }
 0x64e   : > { %v2489_v24 = vld [vmem:[%s4124_s28] ss:$0 sm:$0xff]  ;;  %p3236_p9 = pnand %p3235_p8, %p4123_p2  ;;  %p3242_p5 = scmp.lt.s32.totalorder %s3240_s26, %s3234_s19 }
 0x64f   : > { %s3988_s9 = scalar_lea.hbm %s4125_s30, %s2492_s27 }
 0x650   : > { %p3237_p7 = pneg %p3236_p9  ;;  %p3243_p3 = por %p3242_p5, %p3241_p11 }
 0x652   : > { %p3244_p6 = pnand %p3243_p3, %p3237_p7 }
 0x70c   : > { %v2205_v27 = vpop.f32.mrb[4].mxu0 }
 0x70d   : > { %v2206_v28 = vadd.f32 %v2489_v24, %v2205_v27  ;;  %v2761_v29 = vpop.f32.mrb[5].mxu0 }
 0x70f   : > { %2209 = vst [vmem:[%s580_s20] sm:$0xff] %v2206_v28 }
 0x710   : > { %3247 = shalt.err (!%p3244_p6)
}
 0x711   : > { %s3248_s25 = scalar_lea.hbm %s3988_s9, 128  ;;  %s3252_s14 = scalar_lea.hbm %s4125_s30, 256 }
 0x712   : > { %p3249_p0 = scmp.ne.s32.totalorder %s3988_s9, %s3248_s25  ;;  %p3253_p13 = scmp.lt.u32.totalorder %s3988_s9, %s4125_s30 }
 0x713   : > { %p3254_p1 = scmp.lt.u32.totalorder %s3252_s14, %s3248_s25  ;;  %p3256_p8 = scmp.lt.u32.totalorder %s3248_s25, %s3988_s9 }
 0x714   : > { %p3250_p4 = pnand %p3249_p0, %p4123_p2 }
 0x715   : > { %p3255_p12 = por %p3254_p1, %p3253_p13 }
 0x716   : > { %p3251_p10 = pneg %p3250_p4 }
 0x717   : > { %p3257_p9 = por %p3256_p8, %p3255_p12 }
 0x719   : > { %p3258_p7 = pnand %p3257_p9, %p3251_p10 }
 0x71b   : > { %3261 = shalt.err (!%p3258_p7)
}
 0x71c   : > { %2880 = dma.vmem_to_hbm [thread:$0]  (%p4123_p2), %s3990_s18, 128, %s3988_s9, %s2211_s24  }
 0x71d PF: > { %s4126_s1 = sld [smem:[#allocation25_spill]]  ;;  %s4127_s13 = sld [smem:[#allocation32_spill]] }
 0x71e   : > { %s4128_s28 = sld [smem:[#allocation28_spill]] }
 0x723   : > { %s2259_s27 = sand.u32 1, %s4126_s1   ;;  %p4129_p11 = scmp.ne.s32.totalorder %s4127_s13, 0 }
 0x724   : > { %p4130_p5 = scmp.ge.s32.totalorder %s4128_s28, 2  ;;  %s2260_s20 = scalar_lea.sflag [#allocation6], %s2259_s27 }
 0x726   : > { %p2908_p3 = pnand %p4130_p5, %p4129_p11 }
 0x728   : > { %3303 = dma.done.wait (!%p2908_p3), %s2260_s20, 128  }
 0x729   : > { %3305 = vsyncadd (!%p2908_p3), %s2260_s20, 4294967168  ;;  %s2269_s12 = scalar_lea.sflag [#allocation18], %s2259_s27 }
 0x72a   : > { %3307 = dma.done.wait (!%p2908_p3), %s2269_s12, 512  }
 0x72b   : > { %3309 = vsyncadd (!%p2908_p3), %s2269_s12, 4294966784  ;;  %s37_s26 = sadd.s32 1, %s4128_s28   ;;  %s4131_s11 = sld [smem:[#allocation31_spill]] }
 0x72c   : > { %p34_p6 = scmp.ge.s32.totalorder %s37_s26, 4   ;;  %s4132_s24 = sld [smem:[#allocation27_spill]] }
 0x72d   : > { %s4133_s25 = sld [smem:[#allocation29_spill]]  ;;  %s4134_s21 = smov %s3316_s22 }
 0x72e   : > { %s4135_s22 = smov %s3320_s23  ;;  %36 = sbr.rel (!%p34_p6) target bundleno = 20 (0x14), region = 170 }
 0x731   : > { %s4136_s23 = smov %s4131_s11 }
 0x735   :  { %2274 = vsyncpa [#allocation5], 1 }
 0x736   :  { %2276 = vsyncpa [#allocation5 + $0x1], 1 }
 0x737   :  { %2277 = vsyncpa [#allocation8], 1 }
 0x738   :  { %2279 = vsyncpa [#allocation8 + $0x1], 1 }
 0x739   :  { %2280 = vsyncpa [#allocation11], 1 }
 0x73a   :  { %2281 = vsyncpa [#allocation14], 1 }
 0x73b   :  { %2282 = vsyncpa [#allocation6], 1 }
 0x73c   :  { %2284 = vsyncpa [#allocation6 + $0x1], 1 }
 0x73d   :  { %2285 = vsyncpa [#allocation18], 1 }
 0x73e   :  { %2287 = vsyncpa [#allocation18 + $0x1], 1 }

</bundles_post_ra>
